<compile_context>
chip_gen: v7x
topology: tpu7x:2x2x1
jax: 0.10.0
libtpu: 0.0.40
codegen_flags: <defaults>
</compile_context>

<pallas_src>
import jax
import jax.numpy as jnp
import numpy as np
from jax.experimental import pallas as pl
from jax.experimental.pallas import tpu as pltpu


# ----------------------------- Pallas kernel --------------------------------

def _net_kernel(x_ref, w1b_ref, w2b_ref, wfc1_ref, wfc2_ref, bias_ref, o_ref):
    f32 = jnp.float32
    bf16 = jnp.bfloat16
    tb = o_ref.shape[0]                       # batch-tile size (multiple of 16)

    xv = x_ref[...].reshape(28 * tb, 28)      # bf16, rows = (h_in, b)
    bias = bias_ref[...]                      # (8, 128) f32

    # ---- conv1 (5x5, 1->10): 5 banded row-tap GEMMs ------------------------
    # lanes = parity*128 + (col_pair*10 + channel); rows = (h1, b)
    c1 = jnp.dot(xv[0:24 * tb, :], w1b_ref[0], preferred_element_type=f32)
    for i in range(1, 5):
        c1 = c1 + jnp.dot(xv[i * tb:(i + 24) * tb, :], w1b_ref[i],
                          preferred_element_type=f32)        # (24*tb, 256)

    # ---- 2x2 max-pool (cols = lane halves, rows = reshape) + bias + ReLU ----
    m1 = jnp.maximum(c1[:, :128], c1[:, 128:])               # (24*tb, 128)
    m1 = m1.reshape(12, 2, tb, 128)
    m1 = jnp.maximum(m1[:, 0], m1[:, 1]).reshape(12 * tb, 128)
    p1 = jnp.maximum(m1 + bias[0:1, :], 0.0).astype(bf16)    # (12*tb, 128)

    # ---- conv2 (5x5, 10->20): 5 banded row-tap GEMMs ------------------------
    c2 = jnp.dot(p1[0:8 * tb, :], w2b_ref[0], preferred_element_type=f32)
    for i in range(1, 5):
        c2 = c2 + jnp.dot(p1[i * tb:(i + 8) * tb, :], w2b_ref[i],
                          preferred_element_type=f32)        # (8*tb, 256)
    # conv2_drop (Dropout2d) is identity in eval mode.

    m2 = jnp.maximum(c2[:, :128], c2[:, 128:])               # (8*tb, 128)
    m2 = m2.reshape(4, 2, tb, 128)
    m2 = jnp.maximum(m2[:, 0], m2[:, 1]).reshape(4 * tb, 128)
    p2 = jnp.maximum(m2 + bias[1:2, :], 0.0).astype(bf16)    # (4*tb, 128)

    # ---- fc1 + ReLU: one (tb,512)x(512,128) GEMM ----------------------------
    hcat = jnp.concatenate([p2[y * tb:(y + 1) * tb, :] for y in range(4)],
                           axis=1)                           # (tb, 512) bf16
    z = jnp.dot(hcat, wfc1_ref[...], preferred_element_type=f32) + bias[2:3, :]
    h = jnp.maximum(z, 0.0).astype(bf16)                     # (tb, 128)
    # F.dropout(training=False) is identity in eval mode.

    # ---- fc2 (padded to 128 lanes) + log_softmax ----------------------------
    logits = jnp.dot(h, wfc2_ref[...], preferred_element_type=f32) + bias[3:4, :]
    mx = jnp.max(logits, axis=-1, keepdims=True)
    s = logits - mx
    lse = jnp.log(jnp.sum(jnp.exp(s), axis=-1, keepdims=True))
    o_ref[...] = s - lse                                     # (tb, 128) lane-dense store


# ----------------------------- weight packing (done once) -------------------

def _band_conv1(w1):
    # (5, 28, 256): [i, w_in, parity*128 + x*10 + c] = w1[c, 0, i, w_in - (2x+parity)]
    out = np.zeros((5, 28, 256), np.float32)
    for parity in range(2):
        off = parity * 128
        for i in range(5):
            for x in range(12):
                base = 2 * x + parity
                for j in range(5):
                    out[i, base + j, off + x * 10: off + x * 10 + 10] = w1[:, 0, i, j]
    return out


def _band_conv2(w2):
    # (5, 128, 256): [i, w_in*10 + k, parity*128 + x*20 + n] = w2[n, k, i, w_in - (2x+parity)]
    out = np.zeros((5, 128, 256), np.float32)
    for parity in range(2):
        off = parity * 128
        for i in range(5):
            for x in range(4):
                base = 2 * x + parity
                for j in range(5):
                    w_in = base + j
                    out[i, w_in * 10:(w_in + 1) * 10,
                        off + x * 20: off + x * 20 + 20] = w2[:, :, i, j].T
    return out


def _pack_fc1(fw1):
    # (512, 128): row = y*128 + x*20 + n ; col = o ; value = fw1[o, n*16 + y*4 + x]
    out = np.zeros((512, 128), np.float32)
    w = fw1.reshape(50, 20, 4, 4)             # (o, n, y, x), PyTorch .view order
    for y in range(4):
        for x in range(4):
            for n in range(20):
                out[y * 128 + x * 20 + n, :50] = w[:, n, y, x]
    return out


def _pack_fc2(fw2):
    out = np.zeros((128, 128), np.float32)
    out[:50, :10] = fw2.T
    return out


def _pack_bias(b1, b2, fb1, fb2):
    # row 0: conv1 bias tiled over 12 cols; row 1: conv2 bias tiled over 4 cols;
    # row 2: fc1 bias; row 3: fc2 bias with -1e9 padding (exp() -> 0 in softmax).
    out = np.zeros((8, 128), np.float32)
    out[0, :120] = np.tile(b1, 12)
    out[1, :80] = np.tile(b2, 4)
    out[2, :50] = fb1
    out[3, :] = -1e9
    out[3, :10] = fb2
    return out


def pack_params(params):
    """One-time, tile-size-independent packing of weights (bf16) + biases (f32)."""
    w1, b1, w2, b2, fw1, fb1, fw2, fb2 = [np.asarray(p, dtype=np.float32)
                                          for p in params]
    return {
        "w1b": jnp.asarray(_band_conv1(w1), jnp.bfloat16),
        "w2b": jnp.asarray(_band_conv2(w2), jnp.bfloat16),
        "wfc1": jnp.asarray(_pack_fc1(fw1), jnp.bfloat16),
        "wfc2": jnp.asarray(_pack_fc2(fw2), jnp.bfloat16),
        "bias": jnp.asarray(_pack_bias(b1, b2, fb1, fb2), jnp.float32),
    }


# ----------------------------- forward wrapper -------------------------------

def net_forward(x, packed, tb=None):
    # x: (B, 1, 28, 28) float32 -> (B, 10) log-probs
    B = x.shape[0]
    if tb is None:
        tb = min(128, max(16, ((B + 15) // 16) * 16))
    assert tb % 16 == 0 and tb >= 16
    nb = -(-B // tb)
    Bp = nb * tb

    x2 = x.reshape(B, 28, 28).astype(jnp.float32)
    if Bp != B:
        x2 = jnp.concatenate([x2, jnp.zeros((Bp - B, 28, 28), jnp.float32)], 0)
    x3 = jnp.transpose(x2, (1, 0, 2)).astype(jnp.bfloat16)   # (28, Bp, 28) = (h, b, w)

    in_specs = [
        pl.BlockSpec((28, tb, 28), lambda t: (0, t, 0)),     # x  (batch-tiled)
        pl.BlockSpec((5, 28, 256), lambda t: (0, 0, 0)),     # w1b (resident)
        pl.BlockSpec((5, 128, 256), lambda t: (0, 0, 0)),    # w2b
        pl.BlockSpec((512, 128), lambda t: (0, 0)),          # wfc1
        pl.BlockSpec((128, 128), lambda t: (0, 0)),          # wfc2
        pl.BlockSpec((8, 128), lambda t: (0, 0)),            # biases
    ]

    macs = Bp * (10 * 24 * 24 * 25 + 20 * 8 * 8 * 250 + 320 * 50 + 50 * 10)
    bytes_acc = (x3.size * 2 + packed["w1b"].size * 2 + packed["w2b"].size * 2
                 + packed["wfc1"].size * 2 + packed["wfc2"].size * 2
                 + packed["bias"].size * 4 + Bp * 128 * 4)
    cost = pl.CostEstimate(flops=int(2 * macs), transcendentals=int(Bp * 128),
                           bytes_accessed=int(bytes_acc))

    out = pl.pallas_call(
        _net_kernel,
        out_shape=jax.ShapeDtypeStruct((Bp, 128), jnp.float32),
        grid_spec=pltpu.PrefetchScalarGridSpec(
            num_scalar_prefetch=0,
            grid=(nb,),
            in_specs=in_specs,
            out_specs=pl.BlockSpec((tb, 128), lambda t: (t, 0)),
        ),
        compiler_params=pltpu.CompilerParams(
            dimension_semantics=("parallel",),
            vmem_limit_bytes=32 * 1024 * 1024,
        ),
        cost_estimate=cost,
    )(x3, packed["w1b"], packed["w2b"], packed["wfc1"], packed["wfc2"],
      packed["bias"])

    return out[:B, :10]


# ----------------------------- reference (plain JAX) -------------------------

def _reference_forward(x, params):
    w1, b1, w2, b2, fw1, fb1, fw2, fb2 = params

    def conv(inp, w, b):
        B, Cin, H, W = inp.shape
        Cout, _, k, _ = w.shape
        OH, OW = H - k + 1, W - k + 1
        cols = []
        for c in range(Cin):
            for i in range(k):
                for j in range(k):
                    cols.append(inp[:, c, i:i + OH, j:j + OW])
        patches = jnp.stack(cols, axis=-1).reshape(B * OH * OW, Cin * k * k)
        out = patches @ w.reshape(Cout, -1).T + b
        return out.reshape(B, OH, OW, Cout).transpose(0, 3, 1, 2)

    def pool_relu(t):
        m = jnp.maximum(jnp.maximum(t[:, :, 0::2, 0::2], t[:, :, 0::2, 1::2]),
                        jnp.maximum(t[:, :, 1::2, 0::2], t[:, :, 1::2, 1::2]))
        return jnp.maximum(m, 0.0)

    h = pool_relu(conv(x, w1, b1))
    h = pool_relu(conv(h, w2, b2))
    flat = h.reshape(x.shape[0], 320)
    z = jnp.maximum(flat @ fw1.T + fb1, 0.0)
    logits = z @ fw2.T + fb2
    return jax.nn.log_softmax(logits, axis=-1)


# ----------------------------- init & test -----------------------------------

def init_params(key):
    ks = jax.random.split(key, 8)

    def u(k, shape, fan_in):
        bound = 1.0 / np.sqrt(fan_in)
        return jax.random.uniform(k, shape, jnp.float32, -bound, bound)

    w1 = u(ks[0], (10, 1, 5, 5), 1 * 5 * 5)
    b1 = u(ks[1], (10,), 1 * 5 * 5)
    w2 = u(ks[2], (20, 10, 5, 5), 10 * 5 * 5)
    b2 = u(ks[3], (20,), 10 * 5 * 5)
    fw1 = u(ks[4], (50, 320), 320)            # PyTorch Linear layout (out, in)
    fb1 = u(ks[5], (50,), 320)
    fw2 = u(ks[6], (10, 50), 50)
    fb2 = u(ks[7], (10,), 50)
    return (w1, b1, w2, b2, fw1, fb1, fw2, fb2)


if __name__ == "__main__":
    key = jax.random.PRNGKey(0)
    k_x, k_p = jax.random.split(key)
    x = jax.random.normal(k_x, (2, 1, 28, 28), jnp.float32)
    params = init_params(k_p)

    packed = pack_params(params)              # one-time, tile-independent packing

    out = net_forward(x, packed)
    out = jax.block_until_ready(out)
    ref = jax.block_until_ready(_reference_forward(x, params))

    assert out.shape == (2, 10)
    row_sums = np.asarray(jnp.sum(jnp.exp(out), axis=1))
    assert np.allclose(row_sums, 1.0, atol=1e-3), row_sums
    err = float(np.max(np.abs(np.asarray(out) - np.asarray(ref))))
    assert np.allclose(np.asarray(out), np.asarray(ref), atol=2e-2, rtol=2e-2), err
    print("KERNEL_OK")
</pallas_src>

<mosaic_0001>
module attributes {stable_mosaic.version = 11 : i64} {
  func.func @_net_kernel(%arg0: i32, %arg1: memref<28x16x28xbf16, #tpu.memory_space<vmem>>, %arg2: memref<5x28x256xbf16, #tpu.memory_space<vmem>>, %arg3: memref<5x128x256xbf16, #tpu.memory_space<vmem>>, %arg4: memref<512x128xbf16, #tpu.memory_space<vmem>>, %arg5: memref<128x128xbf16, #tpu.memory_space<vmem>>, %arg6: memref<8x128xf32, #tpu.memory_space<vmem>>, %arg7: memref<16x128xf32, #tpu.memory_space<vmem>>) attributes {dimension_semantics = [#tpu.dimension_semantics<parallel>], iteration_bounds = array<i64: 1>, scalar_prefetch = 0 : i64, scratch_operands = 0 : i64, tpu.core_type = #tpu.core_type<tc>, window_params = [{transform_indices = @transform_0, window_bounds = array<i64: 28, 16, 28>}, {pipeline_mode = #tpu.pipeline_mode<synchronous>, transform_indices = @transform_1, window_bounds = array<i64: 5, 28, 256>}, {pipeline_mode = #tpu.pipeline_mode<synchronous>, transform_indices = @transform_2, window_bounds = array<i64: 5, 128, 256>}, {pipeline_mode = #tpu.pipeline_mode<synchronous>, transform_indices = @transform_3, window_bounds = array<i64: 512, 128>}, {pipeline_mode = #tpu.pipeline_mode<synchronous>, transform_indices = @transform_4, window_bounds = array<i64: 128, 128>}, {pipeline_mode = #tpu.pipeline_mode<synchronous>, transform_indices = @transform_5, window_bounds = array<i64: 8, 128>}, {transform_indices = @transform_6, window_bounds = array<i64: 16, 128>}]} {
    %c0 = arith.constant 0 : index
    %c0_0 = arith.constant 0 : index
    %c0_1 = arith.constant 0 : index
    %0 = vector.load %arg1[%c0, %c0_0, %c0_1] : memref<28x16x28xbf16, #tpu.memory_space<vmem>>, vector<28x16x28xbf16>
    %1 = vector.shape_cast %0 : vector<28x16x28xbf16> to vector<448x28xbf16>
    %c0_2 = arith.constant 0 : index
    %c0_3 = arith.constant 0 : index
    %2 = vector.load %arg6[%c0_2, %c0_3] : memref<8x128xf32, #tpu.memory_space<vmem>>, vector<8x128xf32>
    %3 = vector.extract_strided_slice %1 {offsets = [0, 0], sizes = [384, 28], strides = [1, 1]} : vector<448x28xbf16> to vector<384x28xbf16>
    %c0_4 = arith.constant 0 : index
    %c0_5 = arith.constant 0 : index
    %c0_6 = arith.constant 0 : index
    %4 = vector.load %arg2[%c0_4, %c0_5, %c0_6] : memref<5x28x256xbf16, #tpu.memory_space<vmem>>, vector<1x28x256xbf16>
    %5 = vector.shape_cast %4 : vector<1x28x256xbf16> to vector<28x256xbf16>
    %cst = arith.constant dense<0.000000e+00> : vector<384x256xf32>
    %6 = tpu.matmul %3, %5, %cst {dimension_numbers = #tpu.dot_dimension_numbers<[1], [0], [0], [1], [0, 0, 1, 1], [], []>} : vector<384x28xbf16>, vector<28x256xbf16>, vector<384x256xf32> -> vector<384x256xf32>
    %7 = vector.extract_strided_slice %1 {offsets = [16, 0], sizes = [384, 28], strides = [1, 1]} : vector<448x28xbf16> to vector<384x28xbf16>
    %c1 = arith.constant 1 : index
    %c0_7 = arith.constant 0 : index
    %c0_8 = arith.constant 0 : index
    %8 = vector.load %arg2[%c1, %c0_7, %c0_8] : memref<5x28x256xbf16, #tpu.memory_space<vmem>>, vector<1x28x256xbf16>
    %9 = vector.shape_cast %8 : vector<1x28x256xbf16> to vector<28x256xbf16>
    %cst_9 = arith.constant dense<0.000000e+00> : vector<384x256xf32>
    %10 = tpu.matmul %7, %9, %cst_9 {dimension_numbers = #tpu.dot_dimension_numbers<[1], [0], [0], [1], [0, 0, 1, 1], [], []>} : vector<384x28xbf16>, vector<28x256xbf16>, vector<384x256xf32> -> vector<384x256xf32>
    %11 = arith.addf %6, %10 : vector<384x256xf32>
    %12 = vector.extract_strided_slice %1 {offsets = [32, 0], sizes = [384, 28], strides = [1, 1]} : vector<448x28xbf16> to vector<384x28xbf16>
    %c2 = arith.constant 2 : index
    %c0_10 = arith.constant 0 : index
    %c0_11 = arith.constant 0 : index
    %13 = vector.load %arg2[%c2, %c0_10, %c0_11] : memref<5x28x256xbf16, #tpu.memory_space<vmem>>, vector<1x28x256xbf16>
    %14 = vector.shape_cast %13 : vector<1x28x256xbf16> to vector<28x256xbf16>
    %cst_12 = arith.constant dense<0.000000e+00> : vector<384x256xf32>
    %15 = tpu.matmul %12, %14, %cst_12 {dimension_numbers = #tpu.dot_dimension_numbers<[1], [0], [0], [1], [0, 0, 1, 1], [], []>} : vector<384x28xbf16>, vector<28x256xbf16>, vector<384x256xf32> -> vector<384x256xf32>
    %16 = arith.addf %11, %15 : vector<384x256xf32>
    %17 = vector.extract_strided_slice %1 {offsets = [48, 0], sizes = [384, 28], strides = [1, 1]} : vector<448x28xbf16> to vector<384x28xbf16>
    %c3 = arith.constant 3 : index
    %c0_13 = arith.constant 0 : index
    %c0_14 = arith.constant 0 : index
    %18 = vector.load %arg2[%c3, %c0_13, %c0_14] : memref<5x28x256xbf16, #tpu.memory_space<vmem>>, vector<1x28x256xbf16>
    %19 = vector.shape_cast %18 : vector<1x28x256xbf16> to vector<28x256xbf16>
    %cst_15 = arith.constant dense<0.000000e+00> : vector<384x256xf32>
    %20 = tpu.matmul %17, %19, %cst_15 {dimension_numbers = #tpu.dot_dimension_numbers<[1], [0], [0], [1], [0, 0, 1, 1], [], []>} : vector<384x28xbf16>, vector<28x256xbf16>, vector<384x256xf32> -> vector<384x256xf32>
    %21 = arith.addf %16, %20 : vector<384x256xf32>
    %22 = vector.extract_strided_slice %1 {offsets = [64, 0], sizes = [384, 28], strides = [1, 1]} : vector<448x28xbf16> to vector<384x28xbf16>
    %c4 = arith.constant 4 : index
    %c0_16 = arith.constant 0 : index
    %c0_17 = arith.constant 0 : index
    %23 = vector.load %arg2[%c4, %c0_16, %c0_17] : memref<5x28x256xbf16, #tpu.memory_space<vmem>>, vector<1x28x256xbf16>
    %24 = vector.shape_cast %23 : vector<1x28x256xbf16> to vector<28x256xbf16>
    %cst_18 = arith.constant dense<0.000000e+00> : vector<384x256xf32>
    %25 = tpu.matmul %22, %24, %cst_18 {dimension_numbers = #tpu.dot_dimension_numbers<[1], [0], [0], [1], [0, 0, 1, 1], [], []>} : vector<384x28xbf16>, vector<28x256xbf16>, vector<384x256xf32> -> vector<384x256xf32>
    %26 = arith.addf %21, %25 : vector<384x256xf32>
    %27 = vector.extract_strided_slice %26 {offsets = [0, 0], sizes = [384, 128], strides = [1, 1]} : vector<384x256xf32> to vector<384x128xf32>
    %28 = vector.extract_strided_slice %26 {offsets = [0, 128], sizes = [384, 128], strides = [1, 1]} : vector<384x256xf32> to vector<384x128xf32>
    %29 = arith.maximumf %27, %28 : vector<384x128xf32>
    %30 = vector.shape_cast %29 : vector<384x128xf32> to vector<12x2x16x128xf32>
    %31 = vector.extract_strided_slice %30 {offsets = [0, 0, 0, 0], sizes = [12, 1, 16, 128], strides = [1, 1, 1, 1]} : vector<12x2x16x128xf32> to vector<12x1x16x128xf32>
    %32 = vector.shape_cast %31 : vector<12x1x16x128xf32> to vector<12x16x128xf32>
    %33 = vector.extract_strided_slice %30 {offsets = [0, 1, 0, 0], sizes = [12, 1, 16, 128], strides = [1, 1, 1, 1]} : vector<12x2x16x128xf32> to vector<12x1x16x128xf32>
    %34 = vector.shape_cast %33 : vector<12x1x16x128xf32> to vector<12x16x128xf32>
    %35 = arith.maximumf %32, %34 : vector<12x16x128xf32>
    %36 = vector.shape_cast %35 : vector<12x16x128xf32> to vector<192x128xf32>
    %37 = vector.extract_strided_slice %2 {offsets = [0, 0], sizes = [1, 128], strides = [1, 1]} : vector<8x128xf32> to vector<1x128xf32>
    %38 = vector.broadcast %37 : vector<1x128xf32> to vector<192x128xf32>
    %39 = arith.addf %36, %38 : vector<192x128xf32>
    %cst_19 = arith.constant 0.000000e+00 : f32
    %40 = vector.broadcast %cst_19 : f32 to vector<192x128xf32>
    %41 = arith.maximumf %39, %40 : vector<192x128xf32>
    %42 = arith.truncf %41 : vector<192x128xf32> to vector<192x128xbf16>
    %43 = vector.extract_strided_slice %42 {offsets = [0, 0], sizes = [128, 128], strides = [1, 1]} : vector<192x128xbf16> to vector<128x128xbf16>
    %c0_20 = arith.constant 0 : index
    %c0_21 = arith.constant 0 : index
    %c0_22 = arith.constant 0 : index
    %44 = vector.load %arg3[%c0_20, %c0_21, %c0_22] : memref<5x128x256xbf16, #tpu.memory_space<vmem>>, vector<1x128x256xbf16>
    %45 = vector.shape_cast %44 : vector<1x128x256xbf16> to vector<128x256xbf16>
    %cst_23 = arith.constant dense<0.000000e+00> : vector<128x256xf32>
    %46 = tpu.matmul %43, %45, %cst_23 {dimension_numbers = #tpu.dot_dimension_numbers<[1], [0], [0], [1], [0, 0, 1, 1], [], []>} : vector<128x128xbf16>, vector<128x256xbf16>, vector<128x256xf32> -> vector<128x256xf32>
    %47 = vector.extract_strided_slice %42 {offsets = [16, 0], sizes = [128, 128], strides = [1, 1]} : vector<192x128xbf16> to vector<128x128xbf16>
    %c1_24 = arith.constant 1 : index
    %c0_25 = arith.constant 0 : index
    %c0_26 = arith.constant 0 : index
    %48 = vector.load %arg3[%c1_24, %c0_25, %c0_26] : memref<5x128x256xbf16, #tpu.memory_space<vmem>>, vector<1x128x256xbf16>
    %49 = vector.shape_cast %48 : vector<1x128x256xbf16> to vector<128x256xbf16>
    %cst_27 = arith.constant dense<0.000000e+00> : vector<128x256xf32>
    %50 = tpu.matmul %47, %49, %cst_27 {dimension_numbers = #tpu.dot_dimension_numbers<[1], [0], [0], [1], [0, 0, 1, 1], [], []>} : vector<128x128xbf16>, vector<128x256xbf16>, vector<128x256xf32> -> vector<128x256xf32>
    %51 = arith.addf %46, %50 : vector<128x256xf32>
    %52 = vector.extract_strided_slice %42 {offsets = [32, 0], sizes = [128, 128], strides = [1, 1]} : vector<192x128xbf16> to vector<128x128xbf16>
    %c2_28 = arith.constant 2 : index
    %c0_29 = arith.constant 0 : index
    %c0_30 = arith.constant 0 : index
    %53 = vector.load %arg3[%c2_28, %c0_29, %c0_30] : memref<5x128x256xbf16, #tpu.memory_space<vmem>>, vector<1x128x256xbf16>
    %54 = vector.shape_cast %53 : vector<1x128x256xbf16> to vector<128x256xbf16>
    %cst_31 = arith.constant dense<0.000000e+00> : vector<128x256xf32>
    %55 = tpu.matmul %52, %54, %cst_31 {dimension_numbers = #tpu.dot_dimension_numbers<[1], [0], [0], [1], [0, 0, 1, 1], [], []>} : vector<128x128xbf16>, vector<128x256xbf16>, vector<128x256xf32> -> vector<128x256xf32>
    %56 = arith.addf %51, %55 : vector<128x256xf32>
    %57 = vector.extract_strided_slice %42 {offsets = [48, 0], sizes = [128, 128], strides = [1, 1]} : vector<192x128xbf16> to vector<128x128xbf16>
    %c3_32 = arith.constant 3 : index
    %c0_33 = arith.constant 0 : index
    %c0_34 = arith.constant 0 : index
    %58 = vector.load %arg3[%c3_32, %c0_33, %c0_34] : memref<5x128x256xbf16, #tpu.memory_space<vmem>>, vector<1x128x256xbf16>
    %59 = vector.shape_cast %58 : vector<1x128x256xbf16> to vector<128x256xbf16>
    %cst_35 = arith.constant dense<0.000000e+00> : vector<128x256xf32>
    %60 = tpu.matmul %57, %59, %cst_35 {dimension_numbers = #tpu.dot_dimension_numbers<[1], [0], [0], [1], [0, 0, 1, 1], [], []>} : vector<128x128xbf16>, vector<128x256xbf16>, vector<128x256xf32> -> vector<128x256xf32>
    %61 = arith.addf %56, %60 : vector<128x256xf32>
    %62 = vector.extract_strided_slice %42 {offsets = [64, 0], sizes = [128, 128], strides = [1, 1]} : vector<192x128xbf16> to vector<128x128xbf16>
    %c4_36 = arith.constant 4 : index
    %c0_37 = arith.constant 0 : index
    %c0_38 = arith.constant 0 : index
    %63 = vector.load %arg3[%c4_36, %c0_37, %c0_38] : memref<5x128x256xbf16, #tpu.memory_space<vmem>>, vector<1x128x256xbf16>
    %64 = vector.shape_cast %63 : vector<1x128x256xbf16> to vector<128x256xbf16>
    %cst_39 = arith.constant dense<0.000000e+00> : vector<128x256xf32>
    %65 = tpu.matmul %62, %64, %cst_39 {dimension_numbers = #tpu.dot_dimension_numbers<[1], [0], [0], [1], [0, 0, 1, 1], [], []>} : vector<128x128xbf16>, vector<128x256xbf16>, vector<128x256xf32> -> vector<128x256xf32>
    %66 = arith.addf %61, %65 : vector<128x256xf32>
    %67 = vector.extract_strided_slice %66 {offsets = [0, 0], sizes = [128, 128], strides = [1, 1]} : vector<128x256xf32> to vector<128x128xf32>
    %68 = vector.extract_strided_slice %66 {offsets = [0, 128], sizes = [128, 128], strides = [1, 1]} : vector<128x256xf32> to vector<128x128xf32>
    %69 = arith.maximumf %67, %68 : vector<128x128xf32>
    %70 = vector.shape_cast %69 : vector<128x128xf32> to vector<4x2x16x128xf32>
    %71 = vector.extract_strided_slice %70 {offsets = [0, 0, 0, 0], sizes = [4, 1, 16, 128], strides = [1, 1, 1, 1]} : vector<4x2x16x128xf32> to vector<4x1x16x128xf32>
    %72 = vector.shape_cast %71 : vector<4x1x16x128xf32> to vector<4x16x128xf32>
    %73 = vector.extract_strided_slice %70 {offsets = [0, 1, 0, 0], sizes = [4, 1, 16, 128], strides = [1, 1, 1, 1]} : vector<4x2x16x128xf32> to vector<4x1x16x128xf32>
    %74 = vector.shape_cast %73 : vector<4x1x16x128xf32> to vector<4x16x128xf32>
    %75 = arith.maximumf %72, %74 : vector<4x16x128xf32>
    %76 = vector.shape_cast %75 : vector<4x16x128xf32> to vector<64x128xf32>
    %77 = vector.extract_strided_slice %2 {offsets = [1, 0], sizes = [1, 128], strides = [1, 1]} : vector<8x128xf32> to vector<1x128xf32>
    %78 = vector.broadcast %77 : vector<1x128xf32> to vector<64x128xf32>
    %79 = arith.addf %76, %78 : vector<64x128xf32>
    %cst_40 = arith.constant 0.000000e+00 : f32
    %80 = vector.broadcast %cst_40 : f32 to vector<64x128xf32>
    %81 = arith.maximumf %79, %80 : vector<64x128xf32>
    %82 = arith.truncf %81 : vector<64x128xf32> to vector<64x128xbf16>
    %83 = vector.extract_strided_slice %82 {offsets = [0, 0], sizes = [16, 128], strides = [1, 1]} : vector<64x128xbf16> to vector<16x128xbf16>
    %84 = vector.extract_strided_slice %82 {offsets = [16, 0], sizes = [16, 128], strides = [1, 1]} : vector<64x128xbf16> to vector<16x128xbf16>
    %85 = vector.extract_strided_slice %82 {offsets = [32, 0], sizes = [16, 128], strides = [1, 1]} : vector<64x128xbf16> to vector<16x128xbf16>
    %86 = vector.extract_strided_slice %82 {offsets = [48, 0], sizes = [16, 128], strides = [1, 1]} : vector<64x128xbf16> to vector<16x128xbf16>
    %87 = tpu.concatenate %83, %84, %85, %86 in 1 : vector<16x128xbf16>, vector<16x128xbf16>, vector<16x128xbf16>, vector<16x128xbf16> -> vector<16x512xbf16>
    %c0_41 = arith.constant 0 : index
    %c0_42 = arith.constant 0 : index
    %88 = vector.load %arg4[%c0_41, %c0_42] : memref<512x128xbf16, #tpu.memory_space<vmem>>, vector<512x128xbf16>
    %cst_43 = arith.constant dense<0.000000e+00> : vector<16x128xf32>
    %89 = tpu.matmul %87, %88, %cst_43 {dimension_numbers = #tpu.dot_dimension_numbers<[1], [0], [0], [1], [0, 0, 1, 1], [], []>} : vector<16x512xbf16>, vector<512x128xbf16>, vector<16x128xf32> -> vector<16x128xf32>
    %90 = vector.extract_strided_slice %2 {offsets = [2, 0], sizes = [1, 128], strides = [1, 1]} : vector<8x128xf32> to vector<1x128xf32>
    %91 = vector.broadcast %90 : vector<1x128xf32> to vector<16x128xf32>
    %92 = arith.addf %89, %91 : vector<16x128xf32>
    %cst_44 = arith.constant 0.000000e+00 : f32
    %93 = vector.broadcast %cst_44 : f32 to vector<16x128xf32>
    %94 = arith.maximumf %92, %93 : vector<16x128xf32>
    %95 = arith.truncf %94 : vector<16x128xf32> to vector<16x128xbf16>
    %c0_45 = arith.constant 0 : index
    %c0_46 = arith.constant 0 : index
    %96 = vector.load %arg5[%c0_45, %c0_46] : memref<128x128xbf16, #tpu.memory_space<vmem>>, vector<128x128xbf16>
    %cst_47 = arith.constant dense<0.000000e+00> : vector<16x128xf32>
    %97 = tpu.matmul %95, %96, %cst_47 {dimension_numbers = #tpu.dot_dimension_numbers<[1], [0], [0], [1], [0, 0, 1, 1], [], []>} : vector<16x128xbf16>, vector<128x128xbf16>, vector<16x128xf32> -> vector<16x128xf32>
    %98 = vector.extract_strided_slice %2 {offsets = [3, 0], sizes = [1, 128], strides = [1, 1]} : vector<8x128xf32> to vector<1x128xf32>
    %99 = vector.broadcast %98 : vector<1x128xf32> to vector<16x128xf32>
    %100 = arith.addf %97, %99 : vector<16x128xf32>
    %cst_48 = arith.constant dense<0xFF800000> : vector<16xf32>
    %101 = vector.multi_reduction <maximumf>, %100, %cst_48 [1] : vector<16x128xf32> to vector<16xf32>
    %102 = vector.shape_cast %101 : vector<16xf32> to vector<16x1xf32>
    %103 = vector.broadcast %102 : vector<16x1xf32> to vector<16x128xf32>
    %104 = arith.subf %100, %103 : vector<16x128xf32>
    %105 = math.exp %104 : vector<16x128xf32>
    %cst_49 = arith.constant dense<0.000000e+00> : vector<16xf32>
    %106 = vector.multi_reduction <add>, %105, %cst_49 [1] : vector<16x128xf32> to vector<16xf32>
    %107 = vector.shape_cast %106 : vector<16xf32> to vector<16x1xf32>
    %108 = math.log %107 : vector<16x1xf32>
    %109 = vector.broadcast %108 : vector<16x1xf32> to vector<16x128xf32>
    %110 = arith.subf %104, %109 : vector<16x128xf32>
    %c0_50 = arith.constant 0 : index
    %c0_51 = arith.constant 0 : index
    %111 = vector.load %arg7[%c0_50, %c0_51] : memref<16x128xf32, #tpu.memory_space<vmem>>, vector<16x128xf32>
    tpu.vector_store %arg7[%c0_50, %c0_51], %110 {strides = array<i32>} : memref<16x128xf32, #tpu.memory_space<vmem>>, vector<16x128xf32>,
    return
  }
  func.func @transform_0(%arg0: i32) -> (i32, i32, i32) {
    %c0_i32 = arith.constant 0 : i32
    %c0_i32_0 = arith.constant 0 : i32
    %c0_i32_1 = arith.constant 0 : i32
    return %c0_i32, %arg0, %c0_i32_0 : i32, i32, i32
  }
  func.func @transform_1(%arg0: i32) -> (i32, i32, i32) {
    %c0_i32 = arith.constant 0 : i32
    %c0_i32_0 = arith.constant 0 : i32
    %c0_i32_1 = arith.constant 0 : i32
    %c0_i32_2 = arith.constant 0 : i32
    return %c0_i32, %c0_i32_0, %c0_i32_1 : i32, i32, i32
  }
  func.func @transform_2(%arg0: i32) -> (i32, i32, i32) {
    %c0_i32 = arith.constant 0 : i32
    %c0_i32_0 = arith.constant 0 : i32
    %c0_i32_1 = arith.constant 0 : i32
    %c0_i32_2 = arith.constant 0 : i32
    return %c0_i32, %c0_i32_0, %c0_i32_1 : i32, i32, i32
  }
  func.func @transform_3(%arg0: i32) -> (i32, i32) {
    %c0_i32 = arith.constant 0 : i32
    %c0_i32_0 = arith.constant 0 : i32
    %c0_i32_1 = arith.constant 0 : i32
    return %c0_i32, %c0_i32_0 : i32, i32
  }
  func.func @transform_4(%arg0: i32) -> (i32, i32) {
    %c0_i32 = arith.constant 0 : i32
    %c0_i32_0 = arith.constant 0 : i32
    %c0_i32_1 = arith.constant 0 : i32
    return %c0_i32, %c0_i32_0 : i32, i32
  }
  func.func @transform_5(%arg0: i32) -> (i32, i32) {
    %c0_i32 = arith.constant 0 : i32
    %c0_i32_0 = arith.constant 0 : i32
    %c0_i32_1 = arith.constant 0 : i32
    return %c0_i32, %c0_i32_0 : i32, i32
  }
  func.func @transform_6(%arg0: i32) -> (i32, i32) {
    %c0_i32 = arith.constant 0 : i32
    %c0_i32_0 = arith.constant 0 : i32
    return %arg0, %c0_i32 : i32, i32
  }
}

</mosaic_0001>

<bundles_post_ra>
// kernel: tpu_custom_call.1
= control target key start
LH: loop header
LB: loop body
LE: loop exit
PB: predicated region body
PF: predicated region fallthrough
CT: control target
= control target key end

     0   :  { %11 = vsyncpa [#allocation3], 0  ;;  %s6279_s0 = inlined_call_operand.hbm [shape: bf16[28,16,28], index: 0, kind: input, shape index: {}]   ;;  %s6280_s1 = inlined_call_operand.hbm [shape: bf16[5,28,256], index: 1, kind: input, shape index: {}]   ;;  %s6281_s2 = inlined_call_operand.hbm [shape: bf16[5,128,256], index: 2, kind: input, shape index: {}]   ;;  %s6282_s3 = inlined_call_operand.hbm [shape: bf16[512,128], index: 3, kind: input, shape index: {}]   ;;  %s6283_s4 = inlined_call_operand.hbm [shape: bf16[128,128], index: 4, kind: input, shape index: {}]   ;;  %s6284_s5 = inlined_call_operand.vmem [shape: f32[8,128], index: 5, kind: input, shape index: {}]   ;;  %s6285_s6 = inlined_call_operand.hbm [shape: f32[16,128], index: 6, kind: output, shape index: {}]  }
   0x1   :  { %12 = vsyncpa [#allocation6], 0 }
   0x2   :  { %13 = vsyncpa [#allocation9], 0 }
   0x3   :  { %14 = vsyncpa [#allocation4], 0  ;;  %s5259_s21 = smov [#allocation5]   ;;  %s5119_s25 = scalar_lea.hbm %s6280_s1, 2560 }
   0x4   :  { %s32_s22 = sshll.u32 %s5259_s21, 4  ;;  %p5120_p0 = scmp.ne.s32.totalorder %s6280_s1, %s5119_s25  ;;  %s33_s22 = int_to_ptr.vmem [resolvable:$true] %s32_s22 }
   0x5   :  { %p5123_p1 = scmp.lt.u32.totalorder %s5119_s25, %s6280_s1 }
   0x7   :  { %p5125_p2 = pnand %p5123_p1, %p5120_p0 }
   0x9   :  { %5128 = shalt.err (!%p5125_p2)
}
   0xa   :  { %s5129_s30 = scalar_lea.vmem %s33_s22, 2560  ;;  %p5134_p4 = scmp.lt.s32.totalorder %s33_s22, %s33_s22 }
   0xb   :  { %p5130_p3 = scmp.ne.s32.totalorder %s33_s22, %s5129_s30  ;;  %p5135_p5 = scmp.lt.s32.totalorder %s5129_s30, %s5129_s30 }
   0xd   :  { %p5136_p6 = por %p5135_p5, %p5134_p4 }
   0xf   :  { %p5137_p7 = pnand %p5136_p6, %p5130_p3 }
  0x11   :  { %5140 = shalt.err (!%p5137_p7)
}
  0x12   :  { %s5260_s7 = smov 128   ;;  %s5261_s8 = smov 8  }
  0x13   :  { %38 = dma.hbm_to_vmem [thread:$0]  %s6280_s1, 2560, %s33_s22, [#allocation6], %s5260_s7, %s5260_s7, %s5261_s8  }
  0x14   :  { %s5262_s11 = smov [#allocation8]   ;;  %s5263_s13 = smov [#allocation2]  }
  0x15   :  { %s56_s12 = sshll.u32 %s5262_s11, 4  ;;  %s20_s14 = sshll.u32 %s5263_s13, 4  ;;  %s57_s12 = int_to_ptr.vmem [resolvable:$true] %s56_s12  ;;  %s21_s14 = int_to_ptr.vmem [resolvable:$true] %s20_s14 }
  0x16   :  { %s5141_s17 = scalar_lea.hbm %s6282_s3, 4096 }
  0x17   :  { %p5142_p8 = scmp.ne.s32.totalorder %s6282_s3, %s5141_s17  ;;  %p5145_p9 = scmp.lt.u32.totalorder %s5141_s17, %s6282_s3 }
  0x19   :  { %p5147_p10 = pnand %p5145_p9, %p5142_p8 }
  0x1b   :  { %5150 = shalt.err (!%p5147_p10)
}
  0x1c   :  { %s5151_s1 = scalar_lea.vmem %s57_s12, 4096  ;;  %p5156_p12 = scmp.lt.s32.totalorder %s57_s12, %s57_s12 }
  0x1d   :  { %p5152_p11 = scmp.ne.s32.totalorder %s57_s12, %s5151_s1  ;;  %p5157_p13 = scmp.lt.s32.totalorder %s5151_s1, %s5151_s1 }
  0x1f   :  { %p5158_p0 = por %p5157_p13, %p5156_p12 }
  0x21   :  { %p5159_p1 = pnand %p5158_p0, %p5152_p11 }
  0x23   :  { %5162 = shalt.err (!%p5159_p1)
}
  0x24   :  { %s5264_s22 = smov 64   ;;  %s5265_s23 = smov 4  }
  0x25   :  { %62 = dma.hbm_to_vmem [thread:$0]  %s6282_s3, 4096, %s57_s12, [#allocation9], %s5264_s22, %s5264_s22, %s5265_s23  }
  0x26   :  { %s5163_s28 = scalar_lea.hbm %s6279_s0, 3584 }
  0x27   :  { %p5164_p2 = scmp.ne.s32.totalorder %s6279_s0, %s5163_s28  ;;  %p5167_p3 = scmp.lt.u32.totalorder %s5163_s28, %s6279_s0 }
  0x29   :  { %p5169_p4 = pnand %p5167_p3, %p5164_p2 }
  0x2b   :  { %5172 = shalt.err (!%p5169_p4)
}
  0x2c   :  { %s5173_s11 = scalar_lea.vmem %s21_s14, 3584  ;;  %p5178_p6 = scmp.lt.s32.totalorder %s21_s14, %s21_s14 }
  0x2d   :  { %p5174_p5 = scmp.ne.s32.totalorder %s21_s14, %s5173_s11  ;;  %p5179_p7 = scmp.lt.s32.totalorder %s5173_s11, %s5173_s11 }
  0x2f   :  { %p5180_p8 = por %p5179_p7, %p5178_p6 }
  0x31   :  { %p5181_p9 = pnand %p5180_p8, %p5174_p5 }
  0x33   :  { %5184 = shalt.err (!%p5181_p9)
}
  0x34   :  { %26 = dma.hbm_to_vmem [thread:$0]  %s6279_s0, 3584, %s21_s14, [#allocation3], %s5264_s22, %s5264_s22, %s5265_s23  }
  0x35   :  { %s5266_s13 = smov [#allocation7]   ;;  %s5267_s16 = smov [#allocation10]  }
  0x36   :  { %s44_s15 = sshll.u32 %s5266_s13, 4  ;;  %s68_s17 = sshll.u32 %s5267_s16, 4  ;;  %s45_s15 = int_to_ptr.vmem [resolvable:$true] %s44_s15  ;;  %s69_s17 = int_to_ptr.vmem [resolvable:$true] %s68_s17 }
  0x37   :  { %s5185_s20 = scalar_lea.hbm %s6281_s2, 10240 }
  0x38   :  { %p5186_p10 = scmp.ne.s32.totalorder %s6281_s2, %s5185_s20  ;;  %p5189_p11 = scmp.lt.u32.totalorder %s5185_s20, %s6281_s2 }
  0x3a   :  { %p5191_p12 = pnand %p5189_p11, %p5186_p10 }
  0x3c   :  { %5194 = shalt.err (!%p5191_p12)
}
  0x3d   :  { %s5195_s0 = scalar_lea.vmem %s45_s15, 10240  ;;  %p5200_p0 = scmp.lt.s32.totalorder %s45_s15, %s45_s15 }
  0x3e   :  { %p5196_p13 = scmp.ne.s32.totalorder %s45_s15, %s5195_s0  ;;  %p5201_p1 = scmp.lt.s32.totalorder %s5195_s0, %s5195_s0 }
  0x40   :  { %p5202_p2 = por %p5201_p1, %p5200_p0 }
  0x42   :  { %p5203_p3 = pnand %p5202_p2, %p5196_p13 }
  0x44   :  { %5206 = shalt.err (!%p5203_p3)
}
  0x45   :  { %50 = dma.hbm_to_vmem [thread:$0]  %s6281_s2, 10240, %s45_s15, [#allocation6], %s5260_s7, %s5260_s7, %s5261_s8  }
  0x46   :  { %s5207_s29 = scalar_lea.hbm %s6283_s4, 1024 }
  0x47   :  { %p5208_p4 = scmp.ne.s32.totalorder %s6283_s4, %s5207_s29  ;;  %p5211_p5 = scmp.lt.u32.totalorder %s5207_s29, %s6283_s4 }
  0x49   :  { %p5213_p6 = pnand %p5211_p5, %p5208_p4 }
  0x4b   :  { %5216 = shalt.err (!%p5213_p6)
}
  0x4c   :  { %s5217_s3 = scalar_lea.vmem %s69_s17, 1024  ;;  %p5222_p8 = scmp.lt.s32.totalorder %s69_s17, %s69_s17 }
  0x4d   :  { %p5218_p7 = scmp.ne.s32.totalorder %s69_s17, %s5217_s3  ;;  %p5223_p9 = scmp.lt.s32.totalorder %s5217_s3, %s5217_s3 }
  0x4f   :  { %p5224_p10 = por %p5223_p9, %p5222_p8 }
  0x51   :  { %p5225_p11 = pnand %p5224_p10, %p5218_p7 }
  0x53   :  { %5228 = shalt.err (!%p5225_p11)
}
  0x54   :  { %74 = dma.hbm_to_vmem [thread:$0]  %s6283_s4, 1024, %s69_s17, [#allocation9], %s5264_s22, %s5264_s22, %s5265_s23  }
  0x55   :  { %5251 = dma.done.wait [#allocation3], 3584  }
  0x56   :  { %5252 = vsyncadd [#allocation3], 4294963712 }
  0x57   :  { %5253 = dma.done.wait [#allocation6], 12800  }
  0x58   :  { %5254 = vsyncadd [#allocation6], 4294954496 }
  0x59   :  { %5255 = dma.done.wait [#allocation9], 5120  }
  0x5a   :  { %5256 = vsyncadd [#allocation9], 4294962176  ;;  %v6286_v0 = vmov 0   ;;  %v5384_v1 = vld [vmem:[#allocation5 + $0x4] ss:$8 sps:$4 sm:$0xff]   ;;  %vm370_vm0 = vcmask 1045504  }
  0x5b   :  { %714 = vmatprep.mubr.bf16.mxu0 %v6286_v0  ;;  %409 = vmatprep.mubr.bf16.mxu1 %v6286_v0  ;;  %v5386_v2 = vld [vmem:[#allocation5] ss:$8 sps:$4 sm:$0xff]   ;;  %v5389_v3 = vld [vmem:[#allocation5 + $0x14] ss:$8 sps:$4 sm:$0x3f]   ;;  %vm297_vm1 = vcmask 228352  }
  0x5c   :  { %682 = vmatprep.subr.bf16.mxu0 %v5384_v1  ;;  %v4897_v4 = vld [vmem:[#allocation5 + $0x10] ss:$8 sps:$4 sm:$0x3f]   ;;  %v4901_v6 = vld [vmem:[#allocation5 + $0x44] ss:$8 sps:$4 sm:$0xff]   ;;  %vm5270_vm2 = vmmov 0  }
  0x5d   :  { %683 = vmatpush1.bf16.msra.mxu0 %v5386_v2  ;;  %v5395_v5 = vsel %vm370_vm0, %v4897_v4, 0  ;;  %v4898_v7 = vld [vmem:[#allocation2] sm:$0xff]   ;;  %v4908_v9 = vld [vmem:[#allocation5 + $0x54] ss:$8 sps:$4 sm:$0x3f]   ;;  %v5400_v11 = vld [vmem:[#allocation2 + $0x8] sm:$0xff]  }
  0x5e   :  { %4055 = vmatprep.subr.msk.bf16.mxu0 %vm370_vm0, %v5389_v3  ;;  %v4899_v8 = vld [vmem:[#allocation5 + $0x40] ss:$8 sps:$4 sm:$0xff]   ;;  %v4910_v10 = vld [vmem:[#allocation5 + $0x50] ss:$8 sps:$4 sm:$0x3f]  }
  0x5f   :  { %v987_v12 = vsel %vm370_vm0, %v4910_v10, 0  ;;  %v5407_v13 = vld [vmem:[#allocation2 + $0x10] sm:$0xff]   ;;  %v4919_v14 = vld [vmem:[#allocation5 + $0x64] ss:$8 sps:$4 sm:$0xff]   ;;  %v5412_v15 = vld [vmem:[#allocation2 + $0x18] sm:$0xff]  }
  0x60   :  { %v5417_v16 = vld [vmem:[#allocation2 + $0x20] sm:$0xff]   ;;  %v5422_v17 = vld [vmem:[#allocation2 + $0x28] sm:$0xff]   ;;  %v5427_v18 = vld [vmem:[#allocation2 + $0x30] sm:$0xff]  }
  0x61   :  { %685 = vmatpush1.bf16.msra.mxu0 %v5395_v5  ;;  %v5432_v19 = vld [vmem:[#allocation2 + $0x38] sm:$0xff]   ;;  %v5437_v20 = vld [vmem:[#allocation2 + $0x40] sm:$0xff]   ;;  %v5442_v21 = vld [vmem:[#allocation2 + $0x48] sm:$0xff]  }
  0x62   :  { %992 = vmatprep.subr.bf16.mxu0 %v4901_v6  ;;  %v5447_v22 = vld [vmem:[#allocation2 + $0x50] sm:$0xff]   ;;  %v5452_v23 = vld [vmem:[#allocation2 + $0x58] sm:$0xff]   ;;  %v5457_v24 = vld [vmem:[#allocation2 + $0x60] sm:$0xff]  }
  0x63   :  { %v4917_v25 = vld [vmem:[#allocation5 + $0x60] ss:$8 sps:$4 sm:$0xff]   ;;  %v4922_v26 = vld [vmem:[#allocation5 + $0x74] ss:$8 sps:$4 sm:$0x3f]  }
  0x64   :  { %4056 = vmatmul.mubr.msk.bf16.vlgmr.msra.gmra.mrb[0].mxu0 %vm297_vm1, %v4898_v7  ;;  %v4924_v27 = vld [vmem:[#allocation5 + $0x70] ss:$8 sps:$4 sm:$0x3f]   ;;  %v4938_v29 = vld [vmem:[#allocation5 + $0x84] ss:$8 sps:$4 sm:$0xff]  }
  0x65   :  { %993 = vmatpush1.bf16.msra.mxu0 %v4899_v8  ;;  %724 = vmatprep.mubr.bf16.mxu0 %v6286_v0  ;;  %v1393_v28 = vsel %vm370_vm0, %v4924_v27, 0  ;;  %v4939_v30 = vld [vmem:[#allocation5 + $0x24] ss:$8 sps:$4 sm:$0xff]   ;;  %v4941_v31 = vld [vmem:[#allocation5 + $0x20] ss:$8 sps:$4 sm:$0xff]   ;;  %v5515_v36 = vld [vmem:[#allocation2 + $0x70] sm:$0xff]  }
  0x66   :  { %4085 = vmatprep.subr.msk.bf16.mxu0 %vm370_vm0, %v4908_v9  ;;  %377 = vmatprep.subr.bf16.mxu1 %v4939_v30  ;;  %v4942_v32 = vld [vmem:[#allocation5 + $0x34] ss:$8 sps:$4 sm:$0x3f]   ;;  %v4944_v33 = vld [vmem:[#allocation5 + $0x30] ss:$8 sps:$4 sm:$0x3f]  }
  0x67   :  { %378 = vmatpush1.bf16.msra.mxu1 %v4941_v31  ;;  %v372_v34 = vsel %vm370_vm0, %v4944_v33, 0  ;;  %v5507_v35 = vld [vmem:[#allocation2 + $0x68] sm:$0xff]   ;;  %v5523_v37 = vld [vmem:[#allocation2 + $0x78] sm:$0xff]   ;;  %v5531_v38 = vld [vmem:[#allocation2 + $0x80] sm:$0xff]  }
  0x68   :  { %4025 = vmatprep.subr.msk.bf16.mxu1 %vm370_vm0, %v4942_v32  ;;  %v5539_v39 = vld [vmem:[#allocation2 + $0x88] sm:$0xff]   ;;  %v5547_v40 = vld [vmem:[#allocation2 + $0x90] sm:$0xff]   ;;  %v5555_v41 = vld [vmem:[#allocation2 + $0x98] sm:$0xff]  }
  0x69   :  { %995 = vmatpush1.bf16.msra.mxu0 %v987_v12  ;;  %v5563_v42 = vld [vmem:[#allocation2 + $0xa0] sm:$0xff]   ;;  %v5571_v43 = vld [vmem:[#allocation2 + $0xa8] sm:$0xff]   ;;  %v5579_v44 = vld [vmem:[#allocation2 + $0xb0] sm:$0xff]  }
  0x6a   :  { %1398 = vmatprep.subr.bf16.mxu0 %v4919_v14  ;;  %v5587_v45 = vld [vmem:[#allocation2 + $0xb8] sm:$0xff]   ;;  %v5595_v46 = vld [vmem:[#allocation2 + $0xc0] sm:$0xff]   ;;  %v5603_v47 = vld [vmem:[#allocation2 + $0xc8] sm:$0xff]  }
  0x6b   :  { %380 = vmatpush1.bf16.msra.mxu1 %v372_v34  ;;  %v4936_v48 = vld [vmem:[#allocation5 + $0x80] ss:$8 sps:$4 sm:$0xff]   ;;  %v4945_v49 = vld [vmem:[#allocation5 + $0x94] ss:$8 sps:$4 sm:$0x3f]  }
  0x6c   :  { %4057 = vmatmul.mubr.msk.bf16.gmra.mrb[4].mxu0 %vm297_vm1, %v5400_v11  ;;  %4363 = vmatprep.subr.bf16.mxu1 %v5384_v1  ;;  %v4947_v50 = vld [vmem:[#allocation5 + $0x90] ss:$8 sps:$4 sm:$0x3f]  }
  0x6d   :  { %734 = vmatprep.mubr.bf16.mxu0 %v6286_v0  ;;  %v1799_v51 = vsel %vm370_vm0, %v4947_v50, 0  ;;  %v5745_v52 = vld [vmem:[#allocation2 + $0xd0] sm:$0xff]  }
  0x6e   :  { %4026 = vmatmul.mubr.msk.bf16.vlgmr.msra.gmra.mrb[0].mxu1 %vm297_vm1, %v5400_v11 }
  0x6f   :  { %419 = vmatprep.mubr.bf16.mxu1 %v6286_v0  ;;  %4365 = vmatpush1.bf16.msra.mxu1 %v5386_v2 }
  0x70   :  { %4364 = vmatprep.subr.msk.bf16.mxu1 %vm370_vm0, %v5389_v3 }
  0x73   :  { %4366 = vmatpush1.bf16.msra.mxu1 %v5395_v5 }
  0x74   :  { %4058 = vmatmul.mubr.msk.bf16.gmra.mrb[8].mxu0 %vm297_vm1, %v5407_v13 }
  0x75   :  { %744 = vmatprep.mubr.bf16.mxu0 %v6286_v0 }
  0x76   :  { %4027 = vmatmul.mubr.msk.bf16.gmra.mrb[4].mxu1 %vm297_vm1, %v5407_v13 }
  0x77   :  { %429 = vmatprep.mubr.bf16.mxu1 %v6286_v0 }
  0x7c   :  { %4059 = vmatmul.mubr.msk.bf16.gmra.mrb[12].mxu0 %vm297_vm1, %v5412_v15 }
  0x7d   :  { %754 = vmatprep.mubr.bf16.mxu0 %v6286_v0 }
  0x7e   :  { %4028 = vmatmul.mubr.msk.bf16.gmra.mrb[8].mxu1 %vm297_vm1, %v5412_v15 }
  0x7f   :  { %439 = vmatprep.mubr.bf16.mxu1 %v6286_v0 }
  0x84   :  { %4060 = vmatmul.mubr.msk.bf16.gmra.mrb[16].mxu0 %vm297_vm1, %v5417_v16 }
  0x85   :  { %764 = vmatprep.mubr.bf16.mxu0 %v6286_v0 }
  0x86   :  { %4029 = vmatmul.mubr.msk.bf16.gmra.mrb[12].mxu1 %vm297_vm1, %v5417_v16 }
  0x87   :  { %449 = vmatprep.mubr.bf16.mxu1 %v6286_v0 }
  0x8c   :  { %4061 = vmatmul.mubr.msk.bf16.gmra.mrb[20].mxu0 %vm297_vm1, %v5422_v17 }
  0x8d   :  { %774 = vmatprep.mubr.bf16.mxu0 %v6286_v0 }
  0x8e   :  { %4030 = vmatmul.mubr.msk.bf16.gmra.mrb[16].mxu1 %vm297_vm1, %v5422_v17 }
  0x8f   :  { %459 = vmatprep.mubr.bf16.mxu1 %v6286_v0 }
  0x94   :  { %4062 = vmatmul.mubr.msk.bf16.gmra.mrb[24].mxu0 %vm297_vm1, %v5427_v18 }
  0x95   :  { %784 = vmatprep.mubr.bf16.mxu0 %v6286_v0 }
  0x96   :  { %4031 = vmatmul.mubr.msk.bf16.gmra.mrb[20].mxu1 %vm297_vm1, %v5427_v18 }
  0x97   :  { %469 = vmatprep.mubr.bf16.mxu1 %v6286_v0 }
  0x9c   :  { %4063 = vmatmul.mubr.msk.bf16.gmra.mrb[28].mxu0 %vm297_vm1, %v5432_v19 }
  0x9d   :  { %794 = vmatprep.mubr.bf16.mxu0 %v6286_v0 }
  0x9e   :  { %4032 = vmatmul.mubr.msk.bf16.gmra.mrb[24].mxu1 %vm297_vm1, %v5432_v19 }
  0x9f   :  { %479 = vmatprep.mubr.bf16.mxu1 %v6286_v0 }
  0xa4   :  { %4064 = vmatmul.mubr.msk.bf16.gmra.mrb[32].mxu0 %vm297_vm1, %v5437_v20 }
  0xa5   :  { %804 = vmatprep.mubr.bf16.mxu0 %v6286_v0 }
  0xa6   :  { %4033 = vmatmul.mubr.msk.bf16.gmra.mrb[28].mxu1 %vm297_vm1, %v5437_v20 }
  0xa7   :  { %489 = vmatprep.mubr.bf16.mxu1 %v6286_v0 }
  0xac   :  { %4065 = vmatmul.mubr.msk.bf16.gmra.mrb[36].mxu0 %vm297_vm1, %v5442_v21 }
  0xad   :  { %814 = vmatprep.mubr.bf16.mxu0 %v6286_v0 }
  0xae   :  { %4034 = vmatmul.mubr.msk.bf16.gmra.mrb[32].mxu1 %vm297_vm1, %v5442_v21 }
  0xaf   :  { %499 = vmatprep.mubr.bf16.mxu1 %v6286_v0 }
  0xb4   :  { %4066 = vmatmul.mubr.msk.bf16.gmra.mrb[40].mxu0 %vm297_vm1, %v5447_v22 }
  0xb5   :  { %824 = vmatprep.mubr.bf16.mxu0 %v6286_v0 }
  0xb6   :  { %4035 = vmatmul.mubr.msk.bf16.gmra.mrb[36].mxu1 %vm297_vm1, %v5447_v22 }
  0xb7   :  { %509 = vmatprep.mubr.bf16.mxu1 %v6286_v0 }
  0xbc   :  { %4067 = vmatmul.mubr.msk.bf16.gmra.mrb[44].mxu0 %vm297_vm1, %v5452_v23 }
  0xbd   :  { %834 = vmatprep.mubr.bf16.mxu0 %v6286_v0 }
  0xbe   :  { %4036 = vmatmul.mubr.msk.bf16.gmra.mrb[40].mxu1 %vm297_vm1, %v5452_v23 }
  0xbf   :  { %519 = vmatprep.mubr.bf16.mxu1 %v6286_v0 }
  0xc4   :  { %4068 = vmatmul.mubr.msk.bf16.gmra.mrb[48].mxu0 %vm297_vm1, %v5457_v24 }
  0xc5   :  { %1024 = vmatprep.mubr.bf16.mxu0 %v6286_v0 }
  0xc6   :  { %4037 = vmatmul.mubr.msk.bf16.gmra.mrb[44].mxu1 %vm297_vm1, %v5457_v24 }
  0xc7   :  { %529 = vmatprep.mubr.bf16.mxu1 %v6286_v0 }
  0xcc   :  { %4086 = vmatmul.mubr.msk.bf16.vlgmr.msra.gmra.mrb[0].mxu0 %vm297_vm1, %v5407_v13 }
  0xcd   :  { %1399 = vmatpush1.bf16.msra.mxu0 %v4917_v25  ;;  %1034 = vmatprep.mubr.bf16.mxu0 %v6286_v0 }
  0xce   :  { %4115 = vmatprep.subr.msk.bf16.mxu0 %vm370_vm0, %v4922_v26  ;;  %4038 = vmatmul.mubr.msk.bf16.gmra.mrb[48].mxu1 %vm297_vm1, %v5507_v35 }
  0xcf   :  { %539 = vmatprep.mubr.bf16.mxu1 %v6286_v0 }
  0xd1   :  { %1401 = vmatpush1.bf16.msra.mxu0 %v1393_v28 }
  0xd2   :  { %1804 = vmatprep.subr.bf16.mxu0 %v4938_v29 }
  0xd4   :  { %4087 = vmatmul.mubr.msk.bf16.gmra.mrb[4].mxu0 %vm297_vm1, %v5412_v15 }
  0xd5   :  { %1044 = vmatprep.mubr.bf16.mxu0 %v6286_v0 }
  0xd6   :  { %4039 = vmatmul.mubr.msk.bf16.gmra.mrb[52].mxu1 %vm297_vm1, %v5515_v36 }
  0xd7   :  { %549 = vmatprep.mubr.bf16.mxu1 %v6286_v0 }
  0xdc   :  { %4088 = vmatmul.mubr.msk.bf16.gmra.mrb[8].mxu0 %vm297_vm1, %v5417_v16 }
  0xdd   :  { %1054 = vmatprep.mubr.bf16.mxu0 %v6286_v0 }
  0xde   :  { %4040 = vmatmul.mubr.msk.bf16.gmra.mrb[56].mxu1 %vm297_vm1, %v5523_v37 }
  0xdf   :  { %559 = vmatprep.mubr.bf16.mxu1 %v6286_v0 }
  0xe4   :  { %4089 = vmatmul.mubr.msk.bf16.gmra.mrb[12].mxu0 %vm297_vm1, %v5422_v17 }
  0xe5   :  { %1064 = vmatprep.mubr.bf16.mxu0 %v6286_v0 }
  0xe6   :  { %4041 = vmatmul.mubr.msk.bf16.gmra.mrb[60].mxu1 %vm297_vm1, %v5531_v38 }
  0xe7   :  { %569 = vmatprep.mubr.bf16.mxu1 %v6286_v0 }
  0xec   :  { %4090 = vmatmul.mubr.msk.bf16.gmra.mrb[16].mxu0 %vm297_vm1, %v5427_v18 }
  0xed   :  { %1074 = vmatprep.mubr.bf16.mxu0 %v6286_v0 }
  0xee   :  { %4042 = vmatmul.mubr.msk.bf16.gmra.mrb[64].mxu1 %vm297_vm1, %v5539_v39 }
  0xef   :  { %579 = vmatprep.mubr.bf16.mxu1 %v6286_v0 }
  0xf4   :  { %4091 = vmatmul.mubr.msk.bf16.gmra.mrb[20].mxu0 %vm297_vm1, %v5432_v19 }
  0xf5   :  { %1084 = vmatprep.mubr.bf16.mxu0 %v6286_v0 }
  0xf6   :  { %4043 = vmatmul.mubr.msk.bf16.gmra.mrb[68].mxu1 %vm297_vm1, %v5547_v40 }
  0xf7   :  { %589 = vmatprep.mubr.bf16.mxu1 %v6286_v0 }
  0xfc   :  { %4092 = vmatmul.mubr.msk.bf16.gmra.mrb[24].mxu0 %vm297_vm1, %v5437_v20 }
  0xfd   :  { %1094 = vmatprep.mubr.bf16.mxu0 %v6286_v0 }
  0xfe   :  { %4044 = vmatmul.mubr.msk.bf16.gmra.mrb[72].mxu1 %vm297_vm1, %v5555_v41 }
  0xff   :  { %599 = vmatprep.mubr.bf16.mxu1 %v6286_v0 }
 0x104   :  { %4093 = vmatmul.mubr.msk.bf16.gmra.mrb[28].mxu0 %vm297_vm1, %v5442_v21 }
 0x105   :  { %1104 = vmatprep.mubr.bf16.mxu0 %v6286_v0 }
 0x106   :  { %4045 = vmatmul.mubr.msk.bf16.gmra.mrb[76].mxu1 %vm297_vm1, %v5563_v42 }
 0x107   :  { %609 = vmatprep.mubr.bf16.mxu1 %v6286_v0 }
 0x10c   :  { %4094 = vmatmul.mubr.msk.bf16.gmra.mrb[32].mxu0 %vm297_vm1, %v5447_v22 }
 0x10d   :  { %1114 = vmatprep.mubr.bf16.mxu0 %v6286_v0 }
 0x10e   :  { %4046 = vmatmul.mubr.msk.bf16.gmra.mrb[80].mxu1 %vm297_vm1, %v5571_v43 }
 0x10f   :  { %619 = vmatprep.mubr.bf16.mxu1 %v6286_v0 }
 0x114   :  { %4095 = vmatmul.mubr.msk.bf16.gmra.mrb[36].mxu0 %vm297_vm1, %v5452_v23 }
 0x115   :  { %1124 = vmatprep.mubr.bf16.mxu0 %v6286_v0 }
 0x116   :  { %4047 = vmatmul.mubr.msk.bf16.gmra.mrb[84].mxu1 %vm297_vm1, %v5579_v44 }
 0x117   :  { %629 = vmatprep.mubr.bf16.mxu1 %v6286_v0 }
 0x11c   :  { %4096 = vmatmul.mubr.msk.bf16.gmra.mrb[40].mxu0 %vm297_vm1, %v5457_v24 }
 0x11d   :  { %1134 = vmatprep.mubr.bf16.mxu0 %v6286_v0 }
 0x11e   :  { %4048 = vmatmul.mubr.msk.bf16.gmra.mrb[88].mxu1 %vm297_vm1, %v5587_v45 }
 0x11f   :  { %639 = vmatprep.mubr.bf16.mxu1 %v6286_v0 }
 0x124   :  { %4097 = vmatmul.mubr.msk.bf16.gmra.mrb[44].mxu0 %vm297_vm1, %v5507_v35 }
 0x125   :  { %1144 = vmatprep.mubr.bf16.mxu0 %v6286_v0 }
 0x126   :  { %4049 = vmatmul.mubr.msk.bf16.gmra.mrb[92].mxu1 %vm297_vm1, %v5595_v46 }
 0x127   :  { %844 = vmatprep.mubr.bf16.mxu1 %v6286_v0 }
 0x12c   :  { %4098 = vmatmul.mubr.msk.bf16.gmra.mrb[48].mxu0 %vm297_vm1, %v5515_v36 }
 0x12d   :  { %1154 = vmatprep.mubr.bf16.mxu0 %v6286_v0 }
 0x12e   :  { %4069 = vmatmul.mubr.msk.bf16.vlgmr.msra.gmra.mrb[52].mxu1 %vm297_vm1, %v5507_v35 }
 0x12f   :  { %854 = vmatprep.mubr.bf16.mxu1 %v6286_v0 }
 0x134   :  { %4099 = vmatmul.mubr.msk.bf16.gmra.mrb[52].mxu0 %vm297_vm1, %v5523_v37 }
 0x135   :  { %1164 = vmatprep.mubr.bf16.mxu0 %v6286_v0 }
 0x136   :  { %4070 = vmatmul.mubr.msk.bf16.gmra.mrb[56].mxu1 %vm297_vm1, %v5515_v36 }
 0x137   :  { %864 = vmatprep.mubr.bf16.mxu1 %v6286_v0 }
 0x13c   :  { %4100 = vmatmul.mubr.msk.bf16.gmra.mrb[56].mxu0 %vm297_vm1, %v5531_v38 }
 0x13d   :  { %1174 = vmatprep.mubr.bf16.mxu0 %v6286_v0 }
 0x13e   :  { %4071 = vmatmul.mubr.msk.bf16.gmra.mrb[60].mxu1 %vm297_vm1, %v5523_v37 }
 0x13f   :  { %874 = vmatprep.mubr.bf16.mxu1 %v6286_v0 }
 0x141   :  { %v5749_v53 = vpop.f32.mrb[0].mxu1 }
 0x142   :  { %v5752_v54 = vpop.f32.mrb[1].mxu1 }
 0x143   :  { %v5754_v55 = vpop.f32.mrb[2].mxu1 }
 0x144   :  { %4101 = vmatmul.mubr.msk.bf16.gmra.mrb[60].mxu0 %vm297_vm1, %v5539_v39  ;;  %v5756_v56 = vpop.f32.mrb[3].mxu1 }
 0x145   :  { %1184 = vmatprep.mubr.bf16.mxu0 %v6286_v0 }
 0x146   :  { %4072 = vmatmul.mubr.msk.bf16.gmra.mrb[64].mxu1 %vm297_vm1, %v5531_v38 }
 0x147   :  { %884 = vmatprep.mubr.bf16.mxu1 %v6286_v0 }
 0x149   :  { %v5760_v57 = vpop.f32.mrb[4].mxu1 }
 0x14a   :  { %v5763_v58 = vpop.f32.mrb[5].mxu1 }
 0x14b   :  { %v5765_v59 = vpop.f32.mrb[6].mxu1 }
 0x14c   :  { %4102 = vmatmul.mubr.msk.bf16.gmra.mrb[64].mxu0 %vm297_vm1, %v5547_v40  ;;  %v5767_v60 = vpop.f32.mrb[7].mxu1 }
 0x14d   :  { %1194 = vmatprep.mubr.bf16.mxu0 %v6286_v0 }
 0x14e   :  { %4073 = vmatmul.mubr.msk.bf16.gmra.mrb[68].mxu1 %vm297_vm1, %v5539_v39 }
 0x14f   :  { %894 = vmatprep.mubr.bf16.mxu1 %v6286_v0 }
 0x151   :  { %v5771_v61 = vpop.f32.mrb[8].mxu1 }
 0x152   :  { %v5774_v62 = vpop.f32.mrb[9].mxu1 }
 0x153   :  { %v5776_v63 = vpop.f32.mrb[10].mxu1 }
 0x154   :  { %4103 = vmatmul.mubr.msk.bf16.gmra.mrb[68].mxu0 %vm297_vm1, %v5555_v41  ;;  %v5778_v1 = vpop.f32.mrb[11].mxu1 }
 0x155   :  { %1204 = vmatprep.mubr.bf16.mxu0 %v6286_v0 }
 0x156   :  { %4074 = vmatmul.mubr.msk.bf16.gmra.mrb[72].mxu1 %vm297_vm1, %v5547_v40 }
 0x157   :  { %904 = vmatprep.mubr.bf16.mxu1 %v6286_v0 }
 0x159   :  { %v5782_v2 = vpop.f32.mrb[12].mxu1 }
 0x15a   :  { %v5785_v3 = vpop.f32.mrb[13].mxu1 }
 0x15b   :  { %v5787_v4 = vpop.f32.mrb[14].mxu1 }
 0x15c   :  { %4104 = vmatmul.mubr.msk.bf16.gmra.mrb[72].mxu0 %vm297_vm1, %v5563_v42  ;;  %v5789_v5 = vpop.f32.mrb[15].mxu1 }
 0x15d   :  { %1214 = vmatprep.mubr.bf16.mxu0 %v6286_v0 }
 0x15e   :  { %4075 = vmatmul.mubr.msk.bf16.gmra.mrb[76].mxu1 %vm297_vm1, %v5555_v41 }
 0x15f   :  { %914 = vmatprep.mubr.bf16.mxu1 %v6286_v0 }
 0x161   :  { %v5793_v6 = vpop.f32.mrb[16].mxu1 }
 0x162   :  { %v5796_v7 = vpop.f32.mrb[17].mxu1 }
 0x163   :  { %v5798_v8 = vpop.f32.mrb[18].mxu1 }
 0x164   :  { %4105 = vmatmul.mubr.msk.bf16.gmra.mrb[76].mxu0 %vm297_vm1, %v5571_v43  ;;  %v5800_v9 = vpop.f32.mrb[19].mxu1 }
 0x165   :  { %1224 = vmatprep.mubr.bf16.mxu0 %v6286_v0 }
 0x166   :  { %4076 = vmatmul.mubr.msk.bf16.gmra.mrb[80].mxu1 %vm297_vm1, %v5563_v42 }
 0x167   :  { %924 = vmatprep.mubr.bf16.mxu1 %v6286_v0 }
 0x169   :  { %v5804_v10 = vpop.f32.mrb[20].mxu1 }
 0x16a   :  { %v5807_v11 = vpop.f32.mrb[21].mxu1 }
 0x16b   :  { %v5809_v12 = vpop.f32.mrb[22].mxu1 }
 0x16c   :  { %4106 = vmatmul.mubr.msk.bf16.gmra.mrb[80].mxu0 %vm297_vm1, %v5579_v44  ;;  %v5811_v13 = vpop.f32.mrb[23].mxu1 }
 0x16d   :  { %1234 = vmatprep.mubr.bf16.mxu0 %v6286_v0 }
 0x16e   :  { %4077 = vmatmul.mubr.msk.bf16.gmra.mrb[84].mxu1 %vm297_vm1, %v5571_v43 }
 0x16f   :  { %934 = vmatprep.mubr.bf16.mxu1 %v6286_v0 }
 0x171   :  { %v5815_v14 = vpop.f32.mrb[24].mxu1 }
 0x174   :  { %4107 = vmatmul.mubr.msk.bf16.gmra.mrb[84].mxu0 %vm297_vm1, %v5587_v45 }
 0x175   :  { %1244 = vmatprep.mubr.bf16.mxu0 %v6286_v0 }
 0x176   :  { %4078 = vmatmul.mubr.msk.bf16.gmra.mrb[88].mxu1 %vm297_vm1, %v5579_v44 }
 0x177   :  { %944 = vmatprep.mubr.bf16.mxu1 %v6286_v0 }
 0x17c   :  { %4108 = vmatmul.mubr.msk.bf16.gmra.mrb[88].mxu0 %vm297_vm1, %v5595_v46 }
 0x17d   :  { %1254 = vmatprep.mubr.bf16.mxu0 %v6286_v0 }
 0x17e   :  { %4079 = vmatmul.mubr.msk.bf16.gmra.mrb[92].mxu1 %vm297_vm1, %v5587_v45 }
 0x17f   :  { %2454 = vmatprep.mubr.bf16.mxu1 %v6286_v0 }
 0x184   :  { %4109 = vmatmul.mubr.msk.bf16.gmra.mrb[92].mxu0 %vm297_vm1, %v5603_v47 }
 0x185   :  { %1430 = vmatprep.mubr.bf16.mxu0 %v6286_v0 }
 0x18c   :  { %4116 = vmatmul.mubr.msk.bf16.vlgmr.msra.gmra.mrb[0].mxu0 %vm297_vm1, %v5412_v15  ;;  %v5818_v15 = vpop.f32.mrb[25].mxu1 }
 0x18d   :  { %1805 = vmatpush1.bf16.msra.mxu0 %v4936_v48  ;;  %1440 = vmatprep.mubr.bf16.mxu0 %v6286_v0 }
 0x18e   :  { %4145 = vmatprep.subr.msk.bf16.mxu0 %vm370_vm0, %v4945_v49 }
 0x191   :  { %1807 = vmatpush1.bf16.msra.mxu0 %v1799_v51 }
 0x194   :  { %4117 = vmatmul.mubr.msk.bf16.gmra.mrb[4].mxu0 %vm297_vm1, %v5417_v16 }
 0x195   :  { %1450 = vmatprep.mubr.bf16.mxu0 %v6286_v0 }
 0x19c   :  { %4118 = vmatmul.mubr.msk.bf16.gmra.mrb[8].mxu0 %vm297_vm1, %v5422_v17 }
 0x19d   :  { %1460 = vmatprep.mubr.bf16.mxu0 %v6286_v0 }
 0x1a4   :  { %4119 = vmatmul.mubr.msk.bf16.gmra.mrb[12].mxu0 %vm297_vm1, %v5427_v18 }
 0x1a5   :  { %1470 = vmatprep.mubr.bf16.mxu0 %v6286_v0 }
 0x1ac   :  { %4120 = vmatmul.mubr.msk.bf16.gmra.mrb[16].mxu0 %vm297_vm1, %v5432_v19 }
 0x1ad   :  { %1480 = vmatprep.mubr.bf16.mxu0 %v6286_v0 }
 0x1b4   :  { %4121 = vmatmul.mubr.msk.bf16.gmra.mrb[20].mxu0 %vm297_vm1, %v5437_v20 }
 0x1b5   :  { %1490 = vmatprep.mubr.bf16.mxu0 %v6286_v0 }
 0x1bc   :  { %4122 = vmatmul.mubr.msk.bf16.gmra.mrb[24].mxu0 %vm297_vm1, %v5442_v21 }
 0x1bd   :  { %1500 = vmatprep.mubr.bf16.mxu0 %v6286_v0 }
 0x1c4   :  { %4123 = vmatmul.mubr.msk.bf16.gmra.mrb[28].mxu0 %vm297_vm1, %v5447_v22 }
 0x1c5   :  { %1510 = vmatprep.mubr.bf16.mxu0 %v6286_v0 }
 0x1cc   :  { %4124 = vmatmul.mubr.msk.bf16.gmra.mrb[32].mxu0 %vm297_vm1, %v5452_v23 }
 0x1cd   :  { %1520 = vmatprep.mubr.bf16.mxu0 %v6286_v0 }
 0x1d4   :  { %4125 = vmatmul.mubr.msk.bf16.gmra.mrb[36].mxu0 %vm297_vm1, %v5457_v24 }
 0x1d5   :  { %1530 = vmatprep.mubr.bf16.mxu0 %v6286_v0 }
 0x1dc   :  { %4126 = vmatmul.mubr.msk.bf16.gmra.mrb[40].mxu0 %vm297_vm1, %v5507_v35 }
 0x1dd   :  { %1540 = vmatprep.mubr.bf16.mxu0 %v6286_v0 }
 0x1e4   :  { %4127 = vmatmul.mubr.msk.bf16.gmra.mrb[44].mxu0 %vm297_vm1, %v5515_v36 }
 0x1e5   :  { %1550 = vmatprep.mubr.bf16.mxu0 %v6286_v0 }
 0x1ec   :  { %4128 = vmatmul.mubr.msk.bf16.gmra.mrb[48].mxu0 %vm297_vm1, %v5523_v37 }
 0x1ed   :  { %1560 = vmatprep.mubr.bf16.mxu0 %v6286_v0 }
 0x1f4   :  { %4129 = vmatmul.mubr.msk.bf16.gmra.mrb[52].mxu0 %vm297_vm1, %v5531_v38 }
 0x1f5   :  { %1570 = vmatprep.mubr.bf16.mxu0 %v6286_v0 }
 0x1fc   :  { %4130 = vmatmul.mubr.msk.bf16.gmra.mrb[56].mxu0 %vm297_vm1, %v5539_v39 }
 0x1fd   :  { %1580 = vmatprep.mubr.bf16.mxu0 %v6286_v0 }
 0x204   :  { %4131 = vmatmul.mubr.msk.bf16.gmra.mrb[60].mxu0 %vm297_vm1, %v5547_v40 }
 0x205   :  { %1590 = vmatprep.mubr.bf16.mxu0 %v6286_v0 }
 0x20c   :  { %4132 = vmatmul.mubr.msk.bf16.gmra.mrb[64].mxu0 %vm297_vm1, %v5555_v41 }
 0x20d   :  { %1600 = vmatprep.mubr.bf16.mxu0 %v6286_v0 }
 0x214   :  { %4133 = vmatmul.mubr.msk.bf16.gmra.mrb[68].mxu0 %vm297_vm1, %v5563_v42 }
 0x215   :  { %1610 = vmatprep.mubr.bf16.mxu0 %v6286_v0 }
 0x21c   :  { %4134 = vmatmul.mubr.msk.bf16.gmra.mrb[72].mxu0 %vm297_vm1, %v5571_v43 }
 0x21d   :  { %1620 = vmatprep.mubr.bf16.mxu0 %v6286_v0 }
 0x224   :  { %4135 = vmatmul.mubr.msk.bf16.gmra.mrb[76].mxu0 %vm297_vm1, %v5579_v44 }
 0x225   :  { %1630 = vmatprep.mubr.bf16.mxu0 %v6286_v0 }
 0x22c   :  { %4136 = vmatmul.mubr.msk.bf16.gmra.mrb[80].mxu0 %vm297_vm1, %v5587_v45 }
 0x22d   :  { %1640 = vmatprep.mubr.bf16.mxu0 %v6286_v0 }
 0x234   :  { %4137 = vmatmul.mubr.msk.bf16.gmra.mrb[84].mxu0 %vm297_vm1, %v5595_v46 }
 0x235   :  { %1650 = vmatprep.mubr.bf16.mxu0 %v6286_v0 }
 0x23c   :  { %4138 = vmatmul.mubr.msk.bf16.gmra.mrb[88].mxu0 %vm297_vm1, %v5603_v47 }
 0x23d   :  { %1660 = vmatprep.mubr.bf16.mxu0 %v6286_v0 }
 0x244   :  { %4139 = vmatmul.mubr.msk.bf16.gmra.mrb[92].mxu0 %vm297_vm1, %v5745_v52 }
 0x245   :  { %1836 = vmatprep.mubr.bf16.mxu0 %v6286_v0 }
 0x24c   :  { %4146 = vmatmul.mubr.msk.bf16.vlgmr.msra.gmra.mrb[0].mxu0 %vm297_vm1, %v5417_v16  ;;  %v5820_v16 = vpop.f32.mrb[26].mxu1 }
 0x24d   :  { %1846 = vmatprep.mubr.bf16.mxu0 %v6286_v0 }
 0x254   :  { %4147 = vmatmul.mubr.msk.bf16.gmra.mrb[4].mxu0 %vm297_vm1, %v5422_v17  ;;  %v5822_v17 = vpop.f32.mrb[27].mxu1 }
 0x255   :  { %1856 = vmatprep.mubr.bf16.mxu0 %v6286_v0 }
 0x25c   :  { %4148 = vmatmul.mubr.msk.bf16.gmra.mrb[8].mxu0 %vm297_vm1, %v5427_v18  ;;  %v5826_v18 = vpop.f32.mrb[28].mxu1 }
 0x25d   :  { %1866 = vmatprep.mubr.bf16.mxu0 %v6286_v0 }
 0x264   :  { %4149 = vmatmul.mubr.msk.bf16.gmra.mrb[12].mxu0 %vm297_vm1, %v5432_v19  ;;  %v5829_v19 = vpop.f32.mrb[29].mxu1 }
 0x265   :  { %1876 = vmatprep.mubr.bf16.mxu0 %v6286_v0 }
 0x26c   :  { %4150 = vmatmul.mubr.msk.bf16.gmra.mrb[16].mxu0 %vm297_vm1, %v5437_v20  ;;  %v5831_v20 = vpop.f32.mrb[30].mxu1 }
 0x26d   :  { %1886 = vmatprep.mubr.bf16.mxu0 %v6286_v0 }
 0x274   :  { %4151 = vmatmul.mubr.msk.bf16.gmra.mrb[20].mxu0 %vm297_vm1, %v5442_v21  ;;  %v5833_v21 = vpop.f32.mrb[31].mxu1 }
 0x275   :  { %1896 = vmatprep.mubr.bf16.mxu0 %v6286_v0  ;;  %v5837_v25 = vpop.f32.mrb[32].mxu1 }
 0x276   :  { %v5840_v26 = vpop.f32.mrb[33].mxu1 }
 0x27c   :  { %4152 = vmatmul.mubr.msk.bf16.gmra.mrb[24].mxu0 %vm297_vm1, %v5447_v22  ;;  %v5842_v22 = vpop.f32.mrb[34].mxu1 }
 0x27d   :  { %1906 = vmatprep.mubr.bf16.mxu0 %v6286_v0  ;;  %v5844_v27 = vpop.f32.mrb[35].mxu1 }
 0x27e   :  { %v5846_v28 = vpop.f32.mrb[36].mxu1 }
 0x27f   :  { %v5848_v29 = vpop.f32.mrb[37].mxu1 }
 0x280   :  { %v5850_v30 = vpop.f32.mrb[38].mxu1 }
 0x281   :  { %v5852_v31 = vpop.f32.mrb[39].mxu1 }
 0x284   :  { %4153 = vmatmul.mubr.msk.bf16.gmra.mrb[28].mxu0 %vm297_vm1, %v5452_v23  ;;  %v5856_v23 = vpop.f32.mrb[40].mxu1 }
 0x285   :  { %1916 = vmatprep.mubr.bf16.mxu0 %v6286_v0  ;;  %v5859_v32 = vpop.f32.mrb[41].mxu1 }
 0x286   :  { %v5861_v33 = vpop.f32.mrb[42].mxu1 }
 0x287   :  { %6290 = vst [vmem:[#allocation16_spill] sm:$0xff] %v5861_v33  ;;  %v5863_v34 = vpop.f32.mrb[43].mxu1  ;;  %v4953_v33 = vld [vmem:[#allocation7 + $0x90] ss:$8 sps:$4 sm:$0xff]  }
 0x288   :  { %6291 = vst [vmem:[#allocation17_spill] sm:$0xff] %v5863_v34  ;;  %v5865_v48 = vpop.f32.mrb[44].mxu1 }
 0x289   :  { %6292 = vst [vmem:[#allocation18_spill] sm:$0xff] %v5865_v48  ;;  %v5867_v49 = vpop.f32.mrb[45].mxu1  ;;  %v4950_v48 = vld [vmem:[#allocation7 + $0x80] ss:$8 sps:$4 sm:$0xff]  }
 0x28a   :  { %6293 = vst [vmem:[#allocation19_spill] sm:$0xff] %v5867_v49  ;;  %v5869_v50 = vpop.f32.mrb[46].mxu1  ;;  %v4952_v49 = vld [vmem:[#allocation7 + $0x84] ss:$8 sps:$4 sm:$0xff]  }
 0x28b   :  { %6294 = vst [vmem:[#allocation20_spill] sm:$0xff] %v5869_v50  ;;  %2422 = vmatprep.subr.bf16.mxu1 %v4952_v49  ;;  %v4956_v49 = vld [vmem:[#allocation7 + $0xa0] ss:$8 sps:$4 sm:$0xff]  }
 0x28c   :  { %4154 = vmatmul.mubr.msk.bf16.gmra.mrb[32].mxu0 %vm297_vm1, %v5457_v24  ;;  %v5877_v24 = vpop.f32.mrb[47].mxu1  ;;  %2423 = vmatpush1.bf16.msra.mxu1 %v4950_v48  ;;  %v4961_v48 = vld [vmem:[#allocation7 + $0xb4] ss:$8 sps:$4 sm:$0xff]  }
 0x28d   :  { %1926 = vmatprep.mubr.bf16.mxu0 %v6286_v0  ;;  %v5881_v51 = vpop.f32.mrb[48].mxu1 }
 0x28e   :  { %6295 = vst [vmem:[#allocation21_spill] sm:$0xff] %v5881_v51  ;;  %v5884_v50 = vpop.f32.mrb[49].mxu1  ;;  %v4958_v51 = vld [vmem:[#allocation7 + $0xa4] ss:$8 sps:$4 sm:$0xff]  }
 0x28f   :  { %6296 = vst [vmem:[#allocation22_spill] sm:$0xff] %v5884_v50 }
 0x294   :  { %4155 = vmatmul.mubr.msk.bf16.gmra.mrb[36].mxu0 %vm297_vm1, %v5507_v35  ;;  %v5886_v35 = vpop.f32.mrb[50].mxu1 }
 0x295   :  { %1936 = vmatprep.mubr.bf16.mxu0 %v6286_v0  ;;  %6297 = vst [vmem:[#allocation23_spill] sm:$0xff] %v5886_v35  ;;  %v5888_v34 = vpop.f32.mrb[51].mxu1 }
 0x296   :  { %6298 = vst [vmem:[#allocation24_spill] sm:$0xff] %v5888_v34 }
 0x29c   :  { %4156 = vmatmul.mubr.msk.bf16.gmra.mrb[40].mxu0 %vm297_vm1, %v5515_v36  ;;  %v4955_v36 = vld [vmem:[#allocation7 + $0x94] ss:$8 sps:$4 sm:$0xff]  }
 0x29d   :  { %1946 = vmatprep.mubr.bf16.mxu0 %v6286_v0  ;;  %2424 = vmatprep.subr.bf16.mxu1 %v4955_v36  ;;  %v4959_v36 = vld [vmem:[#allocation7 + $0xb0] ss:$8 sps:$4 sm:$0xff]  }
 0x29e   :  { %2425 = vmatpush1.bf16.msra.mxu1 %v4953_v33 }
 0x29f   :  { %2426 = vmatprep.subr.bf16.mxu1 %v4958_v51  ;;  %v4962_v51 = vld [vmem:[#allocation7 + $0xc0] ss:$8 sps:$4 sm:$0xff]  }
 0x2a2   :  { %2427 = vmatpush1.bf16.msra.mxu1 %v4956_v49  ;;  %v4967_v49 = vld [vmem:[#allocation7 + $0xd4] ss:$8 sps:$4 sm:$0xff]  }
 0x2a3   :  { %2428 = vmatprep.subr.bf16.mxu1 %v4961_v48  ;;  %v4965_v48 = vld [vmem:[#allocation7 + $0xd0] ss:$8 sps:$4 sm:$0xff]  }
 0x2a4   :  { %4157 = vmatmul.mubr.msk.bf16.gmra.mrb[44].mxu0 %vm297_vm1, %v5523_v37  ;;  %v5892_v37 = vpop.f32.mrb[52].mxu1 }
 0x2a5   :  { %1956 = vmatprep.mubr.bf16.mxu0 %v6286_v0  ;;  %v5895_v50 = vpop.f32.mrb[53].mxu1 }
 0x2a6   :  { %6299 = vst [vmem:[#allocation25_spill] sm:$0xff] %v5895_v50  ;;  %v5897_v35 = vpop.f32.mrb[54].mxu1  ;;  %2429 = vmatpush1.bf16.msra.mxu1 %v4959_v36  ;;  %v4964_v50 = vld [vmem:[#allocation7 + $0xc4] ss:$8 sps:$4 sm:$0xff]  }
 0x2a7   :  { %6300 = vst [vmem:[#allocation26_spill] sm:$0xff] %v5897_v35  ;;  %v5899_v34 = vpop.f32.mrb[55].mxu1  ;;  %2430 = vmatprep.subr.bf16.mxu1 %v4964_v50  ;;  %v4968_v50 = vld [vmem:[#allocation7 + $0xe0] ss:$8 sps:$4 sm:$0xff]  }
 0x2a8   :  { %6301 = vst [vmem:[#allocation27_spill] sm:$0xff] %v5899_v34 }
 0x2aa   :  { %2431 = vmatpush1.bf16.msra.mxu1 %v4962_v51  ;;  %v4973_v51 = vld [vmem:[#allocation7 + $0xf4] ss:$8 sps:$4 sm:$0xff]  }
 0x2ab   :  { %2432 = vmatprep.subr.bf16.mxu1 %v4967_v49  ;;  %v4971_v49 = vld [vmem:[#allocation7 + $0xf0] ss:$8 sps:$4 sm:$0xff]  }
 0x2ac   :  { %4158 = vmatmul.mubr.msk.bf16.gmra.mrb[48].mxu0 %vm297_vm1, %v5531_v38  ;;  %v5903_v38 = vpop.f32.mrb[56].mxu1 }
 0x2ad   :  { %1966 = vmatprep.mubr.bf16.mxu0 %v6286_v0  ;;  %v5906_v33 = vpop.f32.mrb[57].mxu1 }
 0x2ae   :  { %6302 = vst [vmem:[#allocation28_spill] sm:$0xff] %v5906_v33  ;;  %v5908_v35 = vpop.f32.mrb[58].mxu1  ;;  %2433 = vmatpush1.bf16.msra.mxu1 %v4965_v48  ;;  %v4970_v33 = vld [vmem:[#allocation7 + $0xe4] ss:$8 sps:$4 sm:$0xff]  }
 0x2af   :  { %6303 = vst [vmem:[#allocation29_spill] sm:$0xff] %v5908_v35  ;;  %v5910_v34 = vpop.f32.mrb[59].mxu1  ;;  %2434 = vmatprep.subr.bf16.mxu1 %v4970_v33 }
 0x2b0   :  { %6304 = vst [vmem:[#allocation30_spill] sm:$0xff] %v5910_v34 }
 0x2b2   :  { %2435 = vmatpush1.bf16.msra.mxu1 %v4968_v50 }
 0x2b3   :  { %2436 = vmatprep.subr.bf16.mxu1 %v4973_v51 }
 0x2b4   :  { %4159 = vmatmul.mubr.msk.bf16.gmra.mrb[52].mxu0 %vm297_vm1, %v5539_v39  ;;  %v5914_v39 = vpop.f32.mrb[60].mxu1 }
 0x2b5   :  { %1976 = vmatprep.mubr.bf16.mxu0 %v6286_v0  ;;  %v5917_v36 = vpop.f32.mrb[61].mxu1 }
 0x2b6   :  { %6305 = vst [vmem:[#allocation31_spill] sm:$0xff] %v5917_v36  ;;  %v5919_v35 = vpop.f32.mrb[62].mxu1  ;;  %2437 = vmatpush1.bf16.msra.mxu1 %v4971_v49 }
 0x2b7   :  { %6306 = vst [vmem:[#allocation32_spill] sm:$0xff] %v5919_v35  ;;  %v5921_v34 = vpop.f32.mrb[63].mxu1 }
 0x2bc   :  { %4160 = vmatmul.mubr.msk.bf16.gmra.mrb[56].mxu0 %vm297_vm1, %v5547_v40  ;;  %v5925_v40 = vpop.f32.mrb[64].mxu1 }
 0x2bd   :  { %1986 = vmatprep.mubr.bf16.mxu0 %v6286_v0  ;;  %v5928_v48 = vpop.f32.mrb[65].mxu1 }
 0x2be   :  { %v5930_v36 = vpop.f32.mrb[66].mxu1 }
 0x2bf   :  { %6307 = vst [vmem:[#allocation33_spill] sm:$0xff] %v5930_v36  ;;  %v5932_v35 = vpop.f32.mrb[67].mxu1 }
 0x2c0   :  { %6308 = vst [vmem:[#allocation34_spill] sm:$0xff] %v5932_v35  ;;  %v5936_v33 = vpop.f32.mrb[68].mxu1 }
 0x2c1   :  { %6309 = vst [vmem:[#allocation35_spill] sm:$0xff] %v5936_v33  ;;  %v5939_v50 = vpop.f32.mrb[69].mxu1 }
 0x2c2   :  { %6310 = vst [vmem:[#allocation36_spill] sm:$0xff] %v5939_v50 }
 0x2c4   :  { %4161 = vmatmul.mubr.msk.bf16.gmra.mrb[60].mxu0 %vm297_vm1, %v5555_v41  ;;  %v5941_v41 = vpop.f32.mrb[70].mxu1 }
 0x2c5   :  { %1996 = vmatprep.mubr.bf16.mxu0 %v6286_v0  ;;  %6311 = vst [vmem:[#allocation37_spill] sm:$0xff] %v5941_v41  ;;  %v5943_v51 = vpop.f32.mrb[71].mxu1 }
 0x2c6   :  { %6312 = vst [vmem:[#allocation38_spill] sm:$0xff] %v5943_v51  ;;  %v5947_v49 = vpop.f32.mrb[72].mxu1 }
 0x2c7   :  { %6313 = vst [vmem:[#allocation39_spill] sm:$0xff] %v5947_v49  ;;  %v5950_v35 = vpop.f32.mrb[73].mxu1 }
 0x2c8   :  { %6314 = vst [vmem:[#allocation40_spill] sm:$0xff] %v5950_v35 }
 0x2cc   :  { %4162 = vmatmul.mubr.msk.bf16.gmra.mrb[64].mxu0 %vm297_vm1, %v5563_v42  ;;  %v5952_v42 = vpop.f32.mrb[74].mxu1 }
 0x2cd   :  { %2006 = vmatprep.mubr.bf16.mxu0 %v6286_v0  ;;  %6315 = vst [vmem:[#allocation41_spill] sm:$0xff] %v5952_v42  ;;  %v5954_v33 = vpop.f32.mrb[75].mxu1 }
 0x2ce   :  { %6316 = vst [vmem:[#allocation42_spill] sm:$0xff] %v5954_v33  ;;  %v5958_v50 = vpop.f32.mrb[76].mxu1 }
 0x2cf   :  { %6317 = vst [vmem:[#allocation43_spill] sm:$0xff] %v5958_v50  ;;  %v5961_v51 = vpop.f32.mrb[77].mxu1 }
 0x2d0   :  { %6318 = vst [vmem:[#allocation44_spill] sm:$0xff] %v5961_v51 }
 0x2d4   :  { %4163 = vmatmul.mubr.msk.bf16.gmra.mrb[68].mxu0 %vm297_vm1, %v5571_v43  ;;  %v5963_v43 = vpop.f32.mrb[78].mxu1 }
 0x2d5   :  { %2016 = vmatprep.mubr.bf16.mxu0 %v6286_v0  ;;  %6319 = vst [vmem:[#allocation45_spill] sm:$0xff] %v5963_v43  ;;  %v5965_v49 = vpop.f32.mrb[79].mxu1 }
 0x2d6   :  { %6320 = vst [vmem:[#allocation46_spill] sm:$0xff] %v5965_v49  ;;  %v5969_v35 = vpop.f32.mrb[80].mxu1 }
 0x2d7   :  { %6321 = vst [vmem:[#allocation47_spill] sm:$0xff] %v5969_v35  ;;  %v5972_v33 = vpop.f32.mrb[81].mxu1 }
 0x2d8   :  { %6322 = vst [vmem:[#allocation48_spill] sm:$0xff] %v5972_v33 }
 0x2dc   :  { %4164 = vmatmul.mubr.msk.bf16.gmra.mrb[72].mxu0 %vm297_vm1, %v5579_v44  ;;  %v5974_v44 = vpop.f32.mrb[82].mxu1 }
 0x2dd   :  { %2026 = vmatprep.mubr.bf16.mxu0 %v6286_v0  ;;  %6323 = vst [vmem:[#allocation49_spill] sm:$0xff] %v5974_v44  ;;  %v5976_v50 = vpop.f32.mrb[83].mxu1 }
 0x2de   :  { %6324 = vst [vmem:[#allocation50_spill] sm:$0xff] %v5976_v50  ;;  %v5980_v51 = vpop.f32.mrb[84].mxu1 }
 0x2df   :  { %6325 = vst [vmem:[#allocation51_spill] sm:$0xff] %v5980_v51  ;;  %v5983_v49 = vpop.f32.mrb[85].mxu1 }
 0x2e0   :  { %6326 = vst [vmem:[#allocation52_spill] sm:$0xff] %v5983_v49 }
 0x2e4   :  { %4165 = vmatmul.mubr.msk.bf16.gmra.mrb[76].mxu0 %vm297_vm1, %v5587_v45  ;;  %v5985_v45 = vpop.f32.mrb[86].mxu1 }
 0x2e5   :  { %2036 = vmatprep.mubr.bf16.mxu0 %v6286_v0  ;;  %6327 = vst [vmem:[#allocation53_spill] sm:$0xff] %v5985_v45  ;;  %v5987_v35 = vpop.f32.mrb[87].mxu1  ;;  %v4949_v45 = vld [vmem:[#allocation2 + $0xd8] sm:$0xff]  }
 0x2e6   :  { %6328 = vst [vmem:[#allocation54_spill] sm:$0xff] %v5987_v35  ;;  %v5991_v33 = vpop.f32.mrb[88].mxu1 }
 0x2e7   :  { %6329 = vst [vmem:[#allocation55_spill] sm:$0xff] %v5991_v33  ;;  %v5994_v50 = vpop.f32.mrb[89].mxu1 }
 0x2e8   :  { %6330 = vst [vmem:[#allocation56_spill] sm:$0xff] %v5994_v50  ;;  %v4976_v50 = vld [vmem:[#allocation7 + $0x4] ss:$8 sps:$4 sm:$0xff]  }
 0x2e9   :  { %2615 = vmatprep.subr.bf16.mxu1 %v4976_v50 }
 0x2ec   :  { %4166 = vmatmul.mubr.msk.bf16.gmra.mrb[80].mxu0 %vm297_vm1, %v5595_v46  ;;  %v5996_v46 = vpop.f32.mrb[90].mxu1 }
 0x2ed   :  { %2046 = vmatprep.mubr.bf16.mxu0 %v6286_v0  ;;  %6331 = vst [vmem:[#allocation57_spill] sm:$0xff] %v5996_v46  ;;  %v5998_v51 = vpop.f32.mrb[91].mxu1 }
 0x2ee   :  { %6332 = vst [vmem:[#allocation58_spill] sm:$0xff] %v5998_v51  ;;  %v6002_v49 = vpop.f32.mrb[92].mxu1  ;;  %v2245_v51 = vlaneseq }
 0x2ef   :  { %6333 = vst [vmem:[#allocation59_spill] sm:$0xff] %v6002_v49  ;;  %v6005_v35 = vpop.f32.mrb[93].mxu1 }
 0x2f0   :  { %6334 = vst [vmem:[#allocation60_spill] sm:$0xff] %v6005_v35 }
 0x2f4   :  { %4167 = vmatmul.mubr.msk.bf16.gmra.mrb[84].mxu0 %vm297_vm1, %v5603_v47  ;;  %v6007_v47 = vpop.f32.mrb[94].mxu1 }
 0x2f5   :  { %2056 = vmatprep.mubr.bf16.mxu0 %v6286_v0  ;;  %6335 = vst [vmem:[#allocation61_spill] sm:$0xff] %v6007_v47  ;;  %v6009_v33 = vpop.f32.mrb[95].mxu1 }
 0x2f6   :  { %6336 = vst [vmem:[#allocation62_spill] sm:$0xff] %v6009_v33  ;;  %v6016_v33 = vshrl.u32 %v2245_v51, 7 }
 0x2f8   :  { %6337 = vst [vmem:[#allocation63_spill] sm:$0xff] %v6016_v33  ;;  %v2247_v50 = vsub.s32 0, %v6016_v33 }
 0x2fc   :  { %4168 = vmatmul.mubr.msk.bf16.gmra.mrb[88].mxu0 %vm297_vm1, %v5745_v52 }
 0x2fd   :  { %2066 = vmatprep.mubr.bf16.mxu0 %v6286_v0 }
 0x304   :  { %4169 = vmatmul.mubr.msk.bf16.gmra.mrb[92].mxu0 %vm297_vm1, %v4949_v45 }
 0x31f   :  { %v1838_v46 = vpop.f32.mrb[0].mxu0 }
 0x320   :  { %v4367_v44 = vadd.f32 %v1838_v46, %v5749_v53  ;;  %v1840_v52 = vpop.f32.mrb[1].mxu0  ;;  %v149_v53 = vld [vmem:[%s6284_s5] sm:$0xff] }
 0x321   :  { %v4368_v49 = vadd.f32 %v1840_v52, %v5752_v54  ;;  %v1842_v43 = vpop.f32.mrb[2].mxu0 }
 0x322   :  { %v4369_v0 = vadd.f32 %v1842_v43, %v5754_v55  ;;  %v1844_v35 = vpop.f32.mrb[3].mxu0 }
 0x323   :  { %v2173_v42 = vmax.f32 %v4367_v44, %v4368_v49  ;;  %v4370_v47 = vadd.f32 %v1844_v35, %v5756_v56  ;;  %v6025_v35 = vrot.slane %v149_v53, %v2247_v50 }
 0x325   :  { %v2174_v41 = vmax.f32 %v4369_v0, %v4370_v47 }
 0x327   :  { %v1848_v45 = vpop.f32.mrb[4].mxu0 }
 0x328   :  { %v4371_v36 = vadd.f32 %v1848_v45, %v5760_v57  ;;  %v1850_v54 = vpop.f32.mrb[5].mxu0 }
 0x329   :  { %v4372_v46 = vadd.f32 %v1850_v54, %v5763_v58  ;;  %v1852_v55 = vpop.f32.mrb[6].mxu0 }
 0x32a   :  { %v4373_v49 = vadd.f32 %v1852_v55, %v5765_v59  ;;  %v1854_v43 = vpop.f32.mrb[7].mxu0 }
 0x32b   :  { %v2175_v56 = vmax.f32 %v4371_v36, %v4372_v46  ;;  %v4374_v0 = vadd.f32 %v1854_v43, %v5767_v60 }
 0x32d   :  { %v2221_v51 = vmax.f32 %v2173_v42, %v2175_v56  ;;  %v2176_v44 = vmax.f32 %v4373_v49, %v4374_v0 }
 0x32f   :  { %v2249_v57 = vadd.f32 %v6025_v35, %v2221_v51  ;;  %v2222_v47 = vmax.f32 %v2174_v41, %v2176_v44  ;;  %v1858_v52 = vpop.f32.mrb[8].mxu0 }
 0x330   :  { %v4375_v45 = vadd.f32 %v1858_v52, %v5771_v61  ;;  %v1860_v33 = vpop.f32.mrb[9].mxu0 }
 0x331   :  { %v2250_v58 = vadd.f32 %v6025_v35, %v2222_v47  ;;  %v4376_v54 = vadd.f32 %v1860_v33, %v5774_v62  ;;  %v1862_v59 = vpop.f32.mrb[10].mxu0  ;;  %v2273_v53 = vmax.f32 %v2249_v57, 0.0 }
 0x332   :  { %v4377_v36 = vadd.f32 %v1862_v59, %v5776_v63  ;;  %v1864_v50 = vpop.f32.mrb[11].mxu0 }
 0x333   :  { %v2274_v46 = vmax.f32 %v2250_v58, 0.0  ;;  %v2177_v60 = vmax.f32 %v4375_v45, %v4376_v54  ;;  %v4378_v42 = vadd.f32 %v1864_v50, %v5778_v1 }
 0x335   :  { %v6034_v55 = vpack.c.bf16 %v2274_v46, %v2273_v53  ;;  %v2178_v41 = vmax.f32 %v4377_v36, %v4378_v42  ;;  %v4974_v46 = vld [vmem:[#allocation7] ss:$8 sps:$4 sm:$0xff]  }
 0x337   :  { %v1868_v49 = vpop.f32.mrb[12].mxu0 }
 0x338   :  { %v4379_v61 = vadd.f32 %v1868_v49, %v5782_v2  ;;  %v1870_v43 = vpop.f32.mrb[13].mxu0 }
 0x339   :  { %v4380_v56 = vadd.f32 %v1870_v43, %v5785_v3  ;;  %v1872_v0 = vpop.f32.mrb[14].mxu0 }
 0x33a   :  { %v4381_v62 = vadd.f32 %v1872_v0, %v5787_v4  ;;  %v1874_v33 = vpop.f32.mrb[15].mxu0 }
 0x33b   :  { %v2179_v63 = vmax.f32 %v4379_v61, %v4380_v56  ;;  %v4382_v51 = vadd.f32 %v1874_v33, %v5789_v5  ;;  %v6338_v61 = vmov 0  }
 0x33d   :  { %v2223_v44 = vmax.f32 %v2177_v60, %v2179_v63  ;;  %v2180_v57 = vmax.f32 %v4381_v62, %v4382_v51  ;;  %v4980_v51 = vld [vmem:[#allocation7 + $0x20] ss:$8 sps:$4 sm:$0xff]  }
 0x33f   :  { %v2251_v1 = vadd.f32 %v6025_v35, %v2223_v44  ;;  %v2224_v47 = vmax.f32 %v2178_v41, %v2180_v57  ;;  %v1878_v52 = vpop.f32.mrb[16].mxu0  ;;  %v4979_v41 = vld [vmem:[#allocation7 + $0x14] ss:$8 sps:$4 sm:$0xff]  }
 0x340   :  { %v4383_v45 = vadd.f32 %v1878_v52, %v5793_v6  ;;  %v1880_v58 = vpop.f32.mrb[17].mxu0  ;;  %v4985_v57 = vld [vmem:[#allocation7 + $0x34] ss:$8 sps:$4 sm:$0xff]  }
 0x341   :  { %v2252_v2 = vadd.f32 %v6025_v35, %v2224_v47  ;;  %v4384_v3 = vadd.f32 %v1880_v58, %v5796_v7  ;;  %v1882_v54 = vpop.f32.mrb[18].mxu0  ;;  %v2275_v36 = vmax.f32 %v2251_v1, 0.0  ;;  %v4983_v58 = vld [vmem:[#allocation7 + $0x30] ss:$8 sps:$4 sm:$0xff]  }
 0x342   :  { %v4385_v4 = vadd.f32 %v1882_v54, %v5798_v8  ;;  %v1884_v59 = vpop.f32.mrb[19].mxu0  ;;  %v4977_v8 = vld [vmem:[#allocation7 + $0x10] ss:$8 sps:$4 sm:$0xff]  }
 0x343   :  { %v2276_v50 = vmax.f32 %v2252_v2, 0.0  ;;  %v2181_v5 = vmax.f32 %v4383_v45, %v4384_v3  ;;  %v4386_v53 = vadd.f32 %v1884_v59, %v5800_v9  ;;  %v4982_v9 = vld [vmem:[#allocation7 + $0x24] ss:$8 sps:$4 sm:$0xff]  }
 0x344   :  { %v4988_v3 = vld [vmem:[#allocation7 + $0x44] ss:$8 sps:$4 sm:$0xff]  }
 0x345   :  { %v6046_v60 = vpack.c.bf16 %v2276_v50, %v2275_v36  ;;  %v2182_v42 = vmax.f32 %v4385_v4, %v4386_v53 }
 0x347   :  { %v1888_v6 = vpop.f32.mrb[20].mxu0  ;;  %2455 = vmatmul.mubr.bf16.vlgmr.msra.gmra.mrb[96].mxu1 %v6046_v60 }
 0x348   :  { %v4387_v49 = vadd.f32 %v1888_v6, %v5804_v10  ;;  %v1890_v7 = vpop.f32.mrb[21].mxu0  ;;  %2464 = vmatprep.mubr.bf16.mxu1 %v6338_v61  ;;  %2616 = vmatpush1.bf16.msra.mxu1 %v4974_v46 }
 0x349   :  { %v4388_v43 = vadd.f32 %v1890_v7, %v5807_v11  ;;  %v1892_v56 = vpop.f32.mrb[22].mxu0  ;;  %2617 = vmatprep.subr.bf16.mxu1 %v4979_v41  ;;  %v4994_v7 = vld [vmem:[#allocation7 + $0x64] ss:$8 sps:$4 sm:$0xff]  }
 0x34a   :  { %v4389_v0 = vadd.f32 %v1892_v56, %v5809_v12  ;;  %v1894_v62 = vpop.f32.mrb[23].mxu0 }
 0x34b   :  { %v2183_v33 = vmax.f32 %v4387_v49, %v4388_v43  ;;  %v4390_v63 = vadd.f32 %v1894_v62, %v5811_v13 }
 0x34c   :  { %2618 = vmatpush1.bf16.msra.mxu1 %v4977_v8 }
 0x34d   :  { %v2225_v44 = vmax.f32 %v2181_v5, %v2183_v33  ;;  %v2184_v10 = vmax.f32 %v4389_v0, %v4390_v63  ;;  %2619 = vmatprep.subr.bf16.mxu1 %v4982_v9  ;;  %v4992_v0 = vld [vmem:[#allocation7 + $0x60] ss:$8 sps:$4 sm:$0xff]   ;;  %v4997_v33 = vld [vmem:[#allocation7 + $0x74] ss:$8 sps:$4 sm:$0xff]  }
 0x34f   :  { %v2226_v1 = vmax.f32 %v2182_v42, %v2184_v10  ;;  %v1898_v47 = vpop.f32.mrb[24].mxu0  ;;  %v2253_v52 = vadd.f32 %v6025_v35, %v2225_v44 }
 0x350   :  { %v4391_v11 = vadd.f32 %v1898_v47, %v5815_v14  ;;  %v1900_v45 = vpop.f32.mrb[25].mxu0  ;;  %2620 = vmatpush1.bf16.msra.mxu1 %v4980_v51  ;;  %v4986_v14 = vld [vmem:[#allocation7 + $0x40] ss:$8 sps:$4 sm:$0xff]   ;;  %v5000_v47 = vld [vmem:[#allocation7 + $0x104] ss:$8 sps:$4 sm:$0xff]  }
 0x351   :  { %v4392_v12 = vadd.f32 %v1900_v45, %v5818_v15  ;;  %v1902_v2 = vpop.f32.mrb[26].mxu0  ;;  %v2254_v13 = vadd.f32 %v6025_v35, %v2226_v1  ;;  %2621 = vmatprep.subr.bf16.mxu1 %v4985_v57  ;;  %v2277_v50 = vmax.f32 %v2253_v52, 0.0  ;;  %v4991_v15 = vld [vmem:[#allocation7 + $0x54] ss:$8 sps:$4 sm:$0xff]   ;;  %v4995_v57 = vld [vmem:[#allocation7 + $0x70] ss:$8 sps:$4 sm:$0xff]  }
 0x352   :  { %v4393_v54 = vadd.f32 %v1902_v2, %v5820_v16  ;;  %v1904_v4 = vpop.f32.mrb[27].mxu0  ;;  %v4989_v16 = vld [vmem:[#allocation7 + $0x50] ss:$8 sps:$4 sm:$0xff]  }
 0x353   :  { %v2185_v59 = vmax.f32 %v4391_v11, %v4392_v12  ;;  %v4394_v36 = vadd.f32 %v1904_v4, %v5822_v17  ;;  %v2278_v5 = vmax.f32 %v2254_v13, 0.0 }
 0x354   :  { %2622 = vmatpush1.bf16.msra.mxu1 %v4983_v58 }
 0x355   :  { %v2186_v53 = vmax.f32 %v4393_v54, %v4394_v36  ;;  %v6060_v46 = vpack.c.bf16 %v2278_v5, %v2277_v50  ;;  %2623 = vmatprep.subr.bf16.mxu1 %v4988_v3 }
 0x357   :  { %v1908_v42 = vpop.f32.mrb[28].mxu0  ;;  %2465 = vmatmul.mubr.bf16.gmra.mrb[100].mxu1 %v6060_v46 }
 0x358   :  { %v4395_v41 = vadd.f32 %v1908_v42, %v5826_v18  ;;  %v1910_v6 = vpop.f32.mrb[29].mxu0  ;;  %2474 = vmatprep.mubr.bf16.mxu1 %v6338_v61  ;;  %2624 = vmatpush1.bf16.msra.mxu1 %v4986_v14 }
 0x359   :  { %v4396_v17 = vadd.f32 %v1910_v6, %v5829_v19  ;;  %v1912_v49 = vpop.f32.mrb[30].mxu0  ;;  %2625 = vmatprep.subr.bf16.mxu1 %v4991_v15 }
 0x35a   :  { %v4397_v8 = vadd.f32 %v1912_v49, %v5831_v20  ;;  %v1914_v43 = vpop.f32.mrb[31].mxu0 }
 0x35b   :  { %v2187_v56 = vmax.f32 %v4395_v41, %v4396_v17  ;;  %v4398_v9 = vadd.f32 %v1914_v43, %v5833_v21  ;;  %v6339_v17 = vld [vmem:[#allocation16_spill] sm:$0xff]  ;;  %v6340_v43 = vld [vmem:[#allocation17_spill] sm:$0xff] }
 0x35c   :  { %2626 = vmatpush1.bf16.msra.mxu1 %v4989_v16 }
 0x35d   :  { %v2227_v62 = vmax.f32 %v2185_v59, %v2187_v56  ;;  %v2188_v18 = vmax.f32 %v4397_v8, %v4398_v9  ;;  %2627 = vmatprep.subr.bf16.mxu1 %v4994_v7 }
 0x35f   :  { %v2255_v63 = vadd.f32 %v6025_v35, %v2227_v62  ;;  %v2228_v51 = vmax.f32 %v2186_v53, %v2188_v18  ;;  %v1918_v44 = vpop.f32.mrb[32].mxu0 }
 0x360   :  { %v4399_v19 = vadd.f32 %v1918_v44, %v5837_v25  ;;  %v1920_v10 = vpop.f32.mrb[33].mxu0  ;;  %2628 = vmatpush1.bf16.msra.mxu1 %v4992_v0  ;;  %v6343_v44 = vld [vmem:[#allocation20_spill] sm:$0xff] }
 0x361   :  { %v2256_v20 = vadd.f32 %v6025_v35, %v2228_v51  ;;  %v4400_v1 = vadd.f32 %v1920_v10, %v5840_v26  ;;  %v1922_v21 = vpop.f32.mrb[34].mxu0  ;;  %2629 = vmatprep.subr.bf16.mxu1 %v4997_v33  ;;  %v2279_v45 = vmax.f32 %v2255_v63, 0.0 }
 0x362   :  { %v4401_v52 = vadd.f32 %v1922_v21, %v5842_v22  ;;  %v1924_v11 = vpop.f32.mrb[35].mxu0 }
 0x363   :  { %v2280_v58 = vmax.f32 %v2256_v20, 0.0  ;;  %v2189_v12 = vmax.f32 %v4399_v19, %v4400_v1  ;;  %v4402_v2 = vadd.f32 %v1924_v11, %v5844_v27 }
 0x364   :  { %2630 = vmatpush1.bf16.msra.mxu1 %v4995_v57 }
 0x365   :  { %v2190_v25 = vmax.f32 %v4401_v52, %v4402_v2  ;;  %v6074_v13 = vpack.c.bf16 %v2280_v58, %v2279_v45  ;;  %2825 = vmatprep.subr.bf16.mxu1 %v5000_v47  ;;  %v6344_v45 = vld [vmem:[#allocation21_spill] sm:$0xff] }
 0x367   :  { %v1928_v3 = vpop.f32.mrb[36].mxu0  ;;  %2475 = vmatmul.mubr.bf16.gmra.mrb[104].mxu1 %v6074_v13 }
 0x368   :  { %v4403_v26 = vadd.f32 %v1928_v3, %v5846_v28  ;;  %v1930_v54 = vpop.f32.mrb[37].mxu0  ;;  %2484 = vmatprep.mubr.bf16.mxu1 %v6338_v61 }
 0x369   :  { %v4404_v22 = vadd.f32 %v1930_v54, %v5848_v29  ;;  %v1932_v4 = vpop.f32.mrb[38].mxu0  ;;  %v6346_v54 = vld [vmem:[#allocation23_spill] sm:$0xff] }
 0x36a   :  { %v4405_v59 = vadd.f32 %v1932_v4, %v5850_v30  ;;  %v1934_v36 = vpop.f32.mrb[39].mxu0 }
 0x36b   :  { %v2191_v27 = vmax.f32 %v4403_v26, %v4404_v22  ;;  %v4406_v50 = vadd.f32 %v1934_v36, %v5852_v31 }
 0x36d   :  { %v2229_v5 = vmax.f32 %v2189_v12, %v2191_v27  ;;  %v2192_v14 = vmax.f32 %v4405_v59, %v4406_v50  ;;  %v6347_v27 = vld [vmem:[#allocation24_spill] sm:$0xff] }
 0x36f   :  { %v2257_v53 = vadd.f32 %v6025_v35, %v2229_v5  ;;  %v2230_v15 = vmax.f32 %v2190_v25, %v2192_v14  ;;  %v1938_v42 = vpop.f32.mrb[40].mxu0  ;;  %v6345_v25 = vld [vmem:[#allocation22_spill] sm:$0xff] }
 0x370   :  { %v4407_v28 = vadd.f32 %v1938_v42, %v5856_v23  ;;  %v1940_v41 = vpop.f32.mrb[41].mxu0  ;;  %v6341_v23 = vld [vmem:[#allocation18_spill] sm:$0xff] }
 0x371   :  { %v2258_v6 = vadd.f32 %v6025_v35, %v2230_v15  ;;  %v4408_v29 = vadd.f32 %v1940_v41, %v5859_v32  ;;  %v1942_v16 = vpop.f32.mrb[42].mxu0  ;;  %v2281_v7 = vmax.f32 %v2257_v53, 0.0  ;;  %v6342_v32 = vld [vmem:[#allocation19_spill] sm:$0xff] }
 0x372   :  { %v4409_v30 = vadd.f32 %v1942_v16, %v6339_v17  ;;  %v1944_v49 = vpop.f32.mrb[43].mxu0 }
 0x373   :  { %v2282_v8 = vmax.f32 %v2258_v6, 0.0  ;;  %v2193_v31 = vmax.f32 %v4407_v28, %v4408_v29  ;;  %v4410_v56 = vadd.f32 %v1944_v49, %v6340_v43  ;;  %v6348_v28 = vld [vmem:[#allocation25_spill] sm:$0xff]  ;;  %v6349_v29 = vld [vmem:[#allocation26_spill] sm:$0xff]  ;;  %v6350_v49 = vld [vmem:[#allocation27_spill] sm:$0xff] }
 0x375   :  { %v6088_v9 = vpack.c.bf16 %v2282_v8, %v2281_v7  ;;  %v2194_v0 = vmax.f32 %v4409_v30, %v4410_v56 }
 0x377   :  { %v1948_v62 = vpop.f32.mrb[44].mxu0  ;;  %2485 = vmatmul.mubr.bf16.gmra.mrb[108].mxu1 %v6088_v9 }
 0x378   :  { %v4411_v18 = vadd.f32 %v1948_v62, %v6341_v23  ;;  %v1950_v33 = vpop.f32.mrb[45].mxu0  ;;  %2494 = vmatprep.mubr.bf16.mxu1 %v6338_v61 }
 0x379   :  { %v4412_v63 = vadd.f32 %v1950_v33, %v6342_v32  ;;  %v1952_v51 = vpop.f32.mrb[46].mxu0 }
 0x37a   :  { %v4413_v19 = vadd.f32 %v1952_v51, %v6343_v44  ;;  %v1954_v10 = vpop.f32.mrb[47].mxu0 }
 0x37b   :  { %v2195_v57 = vmax.f32 %v4411_v18, %v4412_v63  ;;  %v4414_v20 = vadd.f32 %v1954_v10, %v5877_v24  ;;  %v6351_v18 = vld [vmem:[#allocation28_spill] sm:$0xff]  ;;  %v6352_v63 = vld [vmem:[#allocation29_spill] sm:$0xff] }
 0x37d   :  { %v2231_v1 = vmax.f32 %v2193_v31, %v2195_v57  ;;  %v2196_v21 = vmax.f32 %v4413_v19, %v4414_v20  ;;  %v6353_v20 = vld [vmem:[#allocation30_spill] sm:$0xff] }
 0x37f   :  { %v2259_v47 = vadd.f32 %v6025_v35, %v2231_v1  ;;  %v2232_v52 = vmax.f32 %v2194_v0, %v2196_v21  ;;  %v1958_v11 = vpop.f32.mrb[48].mxu0 }
 0x380   :  { %v4415_v58 = vadd.f32 %v1958_v11, %v6344_v45  ;;  %v1960_v12 = vpop.f32.mrb[49].mxu0  ;;  %v6354_v45 = vld [vmem:[#allocation31_spill] sm:$0xff] }
 0x381   :  { %v2260_v2 = vadd.f32 %v6025_v35, %v2232_v52  ;;  %v4416_v3 = vadd.f32 %v1960_v12, %v6345_v25  ;;  %v1962_v26 = vpop.f32.mrb[50].mxu0  ;;  %v2283_v59 = vmax.f32 %v2259_v47, 0.0 }
 0x382   :  { %v4417_v22 = vadd.f32 %v1962_v26, %v6346_v54  ;;  %v1964_v4 = vpop.f32.mrb[51].mxu0 }
 0x383   :  { %v2284_v36 = vmax.f32 %v2260_v2, 0.0  ;;  %v2197_v24 = vmax.f32 %v4415_v58, %v4416_v3  ;;  %v4418_v50 = vadd.f32 %v1964_v4, %v6347_v27  ;;  %v6355_v2 = vld [vmem:[#allocation32_spill] sm:$0xff] }
 0x385   :  { %v6102_v5 = vpack.c.bf16 %v2284_v36, %v2283_v59  ;;  %v2198_v14 = vmax.f32 %v4417_v22, %v4418_v50 }
 0x387   :  { %v1968_v53 = vpop.f32.mrb[52].mxu0  ;;  %2495 = vmatmul.mubr.bf16.gmra.mrb[112].mxu1 %v6102_v5 }
 0x388   :  { %v4419_v15 = vadd.f32 %v1968_v53, %v5892_v37  ;;  %v1970_v42 = vpop.f32.mrb[53].mxu0  ;;  %2504 = vmatprep.mubr.bf16.mxu1 %v6338_v61 }
 0x389   :  { %v4420_v41 = vadd.f32 %v1970_v42, %v6348_v28  ;;  %v1972_v6 = vpop.f32.mrb[54].mxu0 }
 0x38a   :  { %v4421_v16 = vadd.f32 %v1972_v6, %v6349_v29  ;;  %v1974_v17 = vpop.f32.mrb[55].mxu0  ;;  %v6357_v29 = vld [vmem:[#allocation34_spill] sm:$0xff] }
 0x38b   :  { %v2199_v30 = vmax.f32 %v4419_v15, %v4420_v41  ;;  %v4422_v7 = vadd.f32 %v1974_v17, %v6350_v49  ;;  %v6356_v15 = vld [vmem:[#allocation33_spill] sm:$0xff] }
 0x38d   :  { %v2233_v8 = vmax.f32 %v2197_v24, %v2199_v30  ;;  %v2200_v31 = vmax.f32 %v4421_v16, %v4422_v7 }
 0x38f   :  { %v2261_v43 = vadd.f32 %v6025_v35, %v2233_v8  ;;  %v2234_v56 = vmax.f32 %v2198_v14, %v2200_v31  ;;  %v1978_v0 = vpop.f32.mrb[56].mxu0 }
 0x390   :  { %v4423_v37 = vadd.f32 %v1978_v0, %v5903_v38  ;;  %v1980_v62 = vpop.f32.mrb[57].mxu0 }
 0x391   :  { %v2262_v23 = vadd.f32 %v6025_v35, %v2234_v56  ;;  %v4424_v33 = vadd.f32 %v1980_v62, %v6351_v18  ;;  %v1982_v32 = vpop.f32.mrb[58].mxu0  ;;  %v2285_v19 = vmax.f32 %v2261_v43, 0.0  ;;  %v6360_v56 = vld [vmem:[#allocation37_spill] sm:$0xff] }
 0x392   :  { %v4425_v51 = vadd.f32 %v1982_v32, %v6352_v63  ;;  %v1984_v44 = vpop.f32.mrb[59].mxu0 }
 0x393   :  { %v2286_v10 = vmax.f32 %v2262_v23, 0.0  ;;  %v2201_v57 = vmax.f32 %v4423_v37, %v4424_v33  ;;  %v4426_v1 = vadd.f32 %v1984_v44, %v6353_v20  ;;  %v6361_v23 = vld [vmem:[#allocation38_spill] sm:$0xff] }
 0x395   :  { %v6116_v21 = vpack.c.bf16 %v2286_v10, %v2285_v19  ;;  %v2202_v47 = vmax.f32 %v4425_v51, %v4426_v1  ;;  %v6362_v19 = vld [vmem:[#allocation39_spill] sm:$0xff]  ;;  %v6363_v1 = vld [vmem:[#allocation40_spill] sm:$0xff] }
 0x397   :  { %v1988_v52 = vpop.f32.mrb[60].mxu0  ;;  %2505 = vmatmul.mubr.bf16.gmra.mrb[116].mxu1 %v6116_v21 }
 0x398   :  { %v4427_v38 = vadd.f32 %v1988_v52, %v5914_v39  ;;  %v1990_v11 = vpop.f32.mrb[61].mxu0  ;;  %2514 = vmatprep.mubr.bf16.mxu1 %v6338_v61 }
 0x399   :  { %v4428_v58 = vadd.f32 %v1990_v11, %v6354_v45  ;;  %v1992_v12 = vpop.f32.mrb[62].mxu0 }
 0x39a   :  { %v4429_v25 = vadd.f32 %v1992_v12, %v6355_v2  ;;  %v1994_v3 = vpop.f32.mrb[63].mxu0 }
 0x39b   :  { %v2203_v26 = vmax.f32 %v4427_v38, %v4428_v58  ;;  %v4430_v54 = vadd.f32 %v1994_v3, %v5921_v34  ;;  %v6364_v38 = vld [vmem:[#allocation41_spill] sm:$0xff] }
 0x39d   :  { %v2235_v22 = vmax.f32 %v2201_v57, %v2203_v26  ;;  %v2204_v4 = vmax.f32 %v4429_v25, %v4430_v54  ;;  %v6365_v25 = vld [vmem:[#allocation42_spill] sm:$0xff] }
 0x39f   :  { %v2263_v59 = vadd.f32 %v6025_v35, %v2235_v22  ;;  %v2236_v36 = vmax.f32 %v2202_v47, %v2204_v4  ;;  %v1998_v24 = vpop.f32.mrb[64].mxu0  ;;  %v6366_v4 = vld [vmem:[#allocation43_spill] sm:$0xff] }
 0x3a0   :  { %v4431_v39 = vadd.f32 %v1998_v24, %v5925_v40  ;;  %v2000_v27 = vpop.f32.mrb[65].mxu0  ;;  %v6358_v40 = vld [vmem:[#allocation35_spill] sm:$0xff]  ;;  %v6367_v24 = vld [vmem:[#allocation44_spill] sm:$0xff] }
 0x3a1   :  { %v2264_v50 = vadd.f32 %v6025_v35, %v2236_v36  ;;  %v4432_v14 = vadd.f32 %v2000_v27, %v5928_v48  ;;  %v2002_v53 = vpop.f32.mrb[66].mxu0  ;;  %v2287_v41 = vmax.f32 %v2263_v59, 0.0  ;;  %v6359_v48 = vld [vmem:[#allocation36_spill] sm:$0xff] }
 0x3a2   :  { %v4433_v42 = vadd.f32 %v2002_v53, %v6356_v15  ;;  %v2004_v28 = vpop.f32.mrb[67].mxu0 }
 0x3a3   :  { %v2288_v6 = vmax.f32 %v2264_v50, 0.0  ;;  %v2205_v34 = vmax.f32 %v4431_v39, %v4432_v14  ;;  %v4434_v16 = vadd.f32 %v2004_v28, %v6357_v29  ;;  %v6368_v50 = vld [vmem:[#allocation45_spill] sm:$0xff] }
 0x3a4   :  { %v5003_v29 = vld [vmem:[#allocation7 + $0x114] ss:$8 sps:$4 sm:$0xff]  }
 0x3a5   :  { %v6130_v17 = vpack.c.bf16 %v2288_v6, %v2287_v41  ;;  %v2206_v30 = vmax.f32 %v4433_v42, %v4434_v16  ;;  %v6369_v42 = vld [vmem:[#allocation46_spill] sm:$0xff] }
 0x3a6   :  { %v4998_v41 = vld [vmem:[#allocation7 + $0x100] ss:$8 sps:$4 sm:$0xff]  }
 0x3a7   :  { %v2008_v49 = vpop.f32.mrb[68].mxu0  ;;  %2515 = vmatmul.mubr.bf16.gmra.mrb[120].mxu1 %v6130_v17 }
 0x3a8   :  { %v4435_v7 = vadd.f32 %v2008_v49, %v6358_v40  ;;  %v2010_v8 = vpop.f32.mrb[69].mxu0  ;;  %2524 = vmatprep.mubr.bf16.mxu1 %v6338_v61  ;;  %v6370_v40 = vld [vmem:[#allocation47_spill] sm:$0xff] }
 0x3a9   :  { %v4436_v31 = vadd.f32 %v2010_v8, %v6359_v48  ;;  %v2012_v43 = vpop.f32.mrb[70].mxu0  ;;  %v5001_v48 = vld [vmem:[#allocation7 + $0x110] ss:$8 sps:$4 sm:$0xff]  }
 0x3aa   :  { %v4437_v0 = vadd.f32 %v2012_v43, %v6360_v56  ;;  %v2014_v37 = vpop.f32.mrb[71].mxu0 }
 0x3ab   :  { %v2207_v62 = vmax.f32 %v4435_v7, %v4436_v31  ;;  %v4438_v18 = vadd.f32 %v2014_v37, %v6361_v23  ;;  %v6371_v31 = vld [vmem:[#allocation48_spill] sm:$0xff] }
 0x3ad   :  { %v2237_v33 = vmax.f32 %v2205_v34, %v2207_v62  ;;  %v2208_v32 = vmax.f32 %v4437_v0, %v4438_v18  ;;  %v5006_v0 = vld [vmem:[#allocation7 + $0x124] ss:$8 sps:$4 sm:$0xff]   ;;  %v6372_v62 = vld [vmem:[#allocation49_spill] sm:$0xff] }
 0x3af   :  { %v2265_v63 = vadd.f32 %v6025_v35, %v2237_v33  ;;  %v2238_v51 = vmax.f32 %v2206_v30, %v2208_v32  ;;  %v2018_v44 = vpop.f32.mrb[72].mxu0  ;;  %v6373_v33 = vld [vmem:[#allocation50_spill] sm:$0xff] }
 0x3b0   :  { %v4439_v10 = vadd.f32 %v2018_v44, %v6362_v19  ;;  %v2020_v57 = vpop.f32.mrb[73].mxu0  ;;  %v5004_v44 = vld [vmem:[#allocation7 + $0x120] ss:$8 sps:$4 sm:$0xff]  }
 0x3b1   :  { %v2266_v20 = vadd.f32 %v6025_v35, %v2238_v51  ;;  %v4440_v47 = vadd.f32 %v2020_v57, %v6363_v1  ;;  %v2022_v52 = vpop.f32.mrb[74].mxu0  ;;  %v2289_v58 = vmax.f32 %v2265_v63, 0.0  ;;  %v6374_v1 = vld [vmem:[#allocation51_spill] sm:$0xff] }
 0x3b2   :  { %v4441_v11 = vadd.f32 %v2022_v52, %v6364_v38  ;;  %v2024_v45 = vpop.f32.mrb[75].mxu0  ;;  %v5007_v38 = vld [vmem:[#allocation7 + $0x130] ss:$8 sps:$4 sm:$0xff]  }
 0x3b3   :  { %v2290_v12 = vmax.f32 %v2266_v20, 0.0  ;;  %v2209_v2 = vmax.f32 %v4439_v10, %v4440_v47  ;;  %v4442_v3 = vadd.f32 %v2024_v45, %v6365_v25  ;;  %v5009_v10 = vld [vmem:[#allocation7 + $0x134] ss:$8 sps:$4 sm:$0xff]  }
 0x3b5   :  { %v2210_v26 = vmax.f32 %v4441_v11, %v4442_v3  ;;  %v6144_v54 = vpack.c.bf16 %v2290_v12, %v2289_v58  ;;  %v6375_v11 = vld [vmem:[#allocation52_spill] sm:$0xff]  ;;  %v5012_v12 = vld [vmem:[#allocation7 + $0x144] ss:$8 sps:$4 sm:$0xff]  }
 0x3b7   :  { %v2028_v22 = vpop.f32.mrb[76].mxu0  ;;  %2525 = vmatmul.mubr.bf16.gmra.mrb[124].mxu1 %v6144_v54 }
 0x3b8   :  { %v4443_v59 = vadd.f32 %v2028_v22, %v6366_v4  ;;  %v2030_v36 = vpop.f32.mrb[77].mxu0  ;;  %2647 = vmatprep.mubr.bf16.mxu1 %v6338_v61  ;;  %v6377_v22 = vld [vmem:[#allocation54_spill] sm:$0xff] }
 0x3b9   :  { %v4444_v39 = vadd.f32 %v2030_v36, %v6367_v24  ;;  %v2032_v27 = vpop.f32.mrb[78].mxu0  ;;  %v5015_v24 = vld [vmem:[#allocation7 + $0x154] ss:$8 sps:$4 sm:$0xff]  }
 0x3ba   :  { %v4445_v14 = vadd.f32 %v2032_v27, %v6368_v50  ;;  %v2034_v53 = vpop.f32.mrb[79].mxu0 }
 0x3bb   :  { %v2211_v15 = vmax.f32 %v4443_v59, %v4444_v39  ;;  %v4446_v28 = vadd.f32 %v2034_v53, %v6369_v42  ;;  %v5013_v42 = vld [vmem:[#allocation7 + $0x150] ss:$8 sps:$4 sm:$0xff]  }
 0x3bd   :  { %v2239_v6 = vmax.f32 %v2209_v2, %v2211_v15  ;;  %v2212_v34 = vmax.f32 %v4445_v14, %v4446_v28  ;;  %v6376_v2 = vld [vmem:[#allocation53_spill] sm:$0xff]  ;;  %v6378_v14 = vld [vmem:[#allocation55_spill] sm:$0xff]  ;;  %v6379_v28 = vld [vmem:[#allocation56_spill] sm:$0xff] }
 0x3bf   :  { %v2240_v16 = vmax.f32 %v2210_v26, %v2212_v34  ;;  %v2038_v30 = vpop.f32.mrb[80].mxu0  ;;  %2648 = vmatmul.mubr.bf16.vlgmr.msra.gmra.mrb[96].mxu1 %v6034_v55  ;;  %v2267_v49 = vadd.f32 %v6025_v35, %v2239_v6  ;;  %v5018_v34 = vld [vmem:[#allocation7 + $0x164] ss:$8 sps:$4 sm:$0xff]  }
 0x3c0   :  { %v4447_v7 = vadd.f32 %v2038_v30, %v6370_v40  ;;  %v2040_v8 = vpop.f32.mrb[81].mxu0  ;;  %2826 = vmatpush1.bf16.msra.mxu1 %v4998_v41  ;;  %2657 = vmatprep.mubr.bf16.mxu1 %v6338_v61 }
 0x3c1   :  { %v4448_v43 = vadd.f32 %v2040_v8, %v6371_v31  ;;  %v2042_v56 = vpop.f32.mrb[82].mxu0  ;;  %2827 = vmatprep.subr.bf16.mxu1 %v5003_v29  ;;  %v2268_v37 = vadd.f32 %v6025_v35, %v2240_v16  ;;  %v2291_v63 = vmax.f32 %v2267_v49, 0.0  ;;  %v6380_v16 = vld [vmem:[#allocation57_spill] sm:$0xff] }
 0x3c2   :  { %v4449_v23 = vadd.f32 %v2042_v56, %v6372_v62  ;;  %v2044_v18 = vpop.f32.mrb[83].mxu0 }
 0x3c3   :  { %v2213_v55 = vmax.f32 %v4447_v7, %v4448_v43  ;;  %v4450_v32 = vadd.f32 %v2044_v18, %v6373_v33  ;;  %v2292_v51 = vmax.f32 %v2268_v37, 0.0  ;;  %v6381_v7 = vld [vmem:[#allocation58_spill] sm:$0xff]  ;;  %v5019_v33 = vld [vmem:[#allocation7 + $0x170] ss:$8 sps:$4 sm:$0xff]  }
 0x3c4   :  { %2828 = vmatpush1.bf16.msra.mxu1 %v5001_v48  ;;  %v5016_v43 = vld [vmem:[#allocation7 + $0x160] ss:$8 sps:$4 sm:$0xff]  }
 0x3c5   :  { %v2214_v19 = vmax.f32 %v4449_v23, %v4450_v32  ;;  %2829 = vmatprep.subr.bf16.mxu1 %v5006_v0  ;;  %v6160_v57 = vpack.c.bf16 %v2292_v51, %v2291_v63  ;;  %v5021_v0 = vld [vmem:[#allocation7 + $0x174] ss:$8 sps:$4 sm:$0xff]   ;;  %v6382_v23 = vld [vmem:[#allocation59_spill] sm:$0xff] }
 0x3c6   :  { %v6383_v32 = vld [vmem:[#allocation60_spill] sm:$0xff] }
 0x3c7   :  { %v2048_v20 = vpop.f32.mrb[84].mxu0  ;;  %2658 = vmatmul.mubr.bf16.gmra.mrb[100].mxu1 %v6046_v60  ;;  %v5010_v60 = vld [vmem:[#allocation7 + $0x140] ss:$8 sps:$4 sm:$0xff]  }
 0x3c8   :  { %v4451_v47 = vadd.f32 %v2048_v20, %v6374_v1  ;;  %v2050_v52 = vpop.f32.mrb[85].mxu0  ;;  %2667 = vmatprep.mubr.bf16.mxu1 %v6338_v61  ;;  %2830 = vmatpush1.bf16.msra.mxu1 %v5004_v44  ;;  %v5024_v44 = vld [vmem:[#allocation7 + $0x184] ss:$8 sps:$4 sm:$0xff]  }
 0x3c9   :  { %v4452_v45 = vadd.f32 %v2050_v52, %v6375_v11  ;;  %v2052_v58 = vpop.f32.mrb[86].mxu0  ;;  %2831 = vmatprep.subr.bf16.mxu1 %v5009_v10 }
 0x3ca   :  { %v4453_v25 = vadd.f32 %v2052_v58, %v6376_v2  ;;  %v2054_v3 = vpop.f32.mrb[87].mxu0 }
 0x3cb   :  { %v2215_v26 = vmax.f32 %v4451_v47, %v4452_v45  ;;  %v4454_v4 = vadd.f32 %v2054_v3, %v6377_v22  ;;  %v6385_v47 = vld [vmem:[#allocation62_spill] sm:$0xff]  ;;  %v5027_v22 = vld [vmem:[#allocation7 + $0x194] ss:$8 sps:$4 sm:$0xff]  }
 0x3cc   :  { %2832 = vmatpush1.bf16.msra.mxu1 %v5007_v38 }
 0x3cd   :  { %v2241_v59 = vmax.f32 %v2213_v55, %v2215_v26  ;;  %v2216_v36 = vmax.f32 %v4453_v25, %v4454_v4  ;;  %2833 = vmatprep.subr.bf16.mxu1 %v5012_v12  ;;  %v5022_v26 = vld [vmem:[#allocation7 + $0x180] ss:$8 sps:$4 sm:$0xff]   ;;  %v5030_v4 = vld [vmem:[#allocation7 + $0x1a4] ss:$8 sps:$4 sm:$0xff]  }
 0x3cf   :  { %v2242_v39 = vmax.f32 %v2214_v19, %v2216_v36  ;;  %v2058_v27 = vpop.f32.mrb[88].mxu0  ;;  %2668 = vmatmul.mubr.bf16.gmra.mrb[104].mxu1 %v6060_v46  ;;  %v2269_v50 = vadd.f32 %v6025_v35, %v2241_v59  ;;  %v6384_v19 = vld [vmem:[#allocation61_spill] sm:$0xff] }
 0x3d0   :  { %v4455_v53 = vadd.f32 %v2058_v27, %v6378_v14  ;;  %v2060_v15 = vpop.f32.mrb[89].mxu0  ;;  %2677 = vmatprep.mubr.bf16.mxu1 %v6338_v61  ;;  %2834 = vmatpush1.bf16.msra.mxu1 %v5010_v60  ;;  %v5028_v60 = vld [vmem:[#allocation7 + $0x1a0] ss:$8 sps:$4 sm:$0xff]   ;;  %v5033_v59 = vld [vmem:[#allocation7 + $0x1b4] ss:$8 sps:$4 sm:$0xff]  }
 0x3d1   :  { %v4456_v41 = vadd.f32 %v2060_v15, %v6379_v28  ;;  %v2062_v6 = vpop.f32.mrb[90].mxu0  ;;  %2835 = vmatprep.subr.bf16.mxu1 %v5015_v24  ;;  %v2270_v29 = vadd.f32 %v6025_v35, %v2242_v39  ;;  %v2293_v48 = vmax.f32 %v2269_v50, 0.0  ;;  %v5031_v36 = vld [vmem:[#allocation7 + $0x1b0] ss:$8 sps:$4 sm:$0xff]   ;;  %v5036_v24 = vld [vmem:[#allocation7 + $0x1c4] ss:$8 sps:$4 sm:$0xff]  }
 0x3d2   :  { %v4457_v30 = vadd.f32 %v2062_v6, %v6380_v16  ;;  %v2064_v49 = vpop.f32.mrb[91].mxu0  ;;  %v5039_v39 = vld [vmem:[#allocation7 + $0x1d4] ss:$8 sps:$4 sm:$0xff]   ;;  %v5037_v27 = vld [vmem:[#allocation7 + $0x1d0] ss:$8 sps:$4 sm:$0xff]  }
 0x3d3   :  { %v2217_v40 = vmax.f32 %v4455_v53, %v4456_v41  ;;  %v4458_v8 = vadd.f32 %v2064_v49, %v6381_v7  ;;  %v2294_v31 = vmax.f32 %v2270_v29, 0.0  ;;  %v5042_v50 = vld [vmem:[#allocation7 + $0x1e4] ss:$8 sps:$4 sm:$0xff]   ;;  %v5040_v14 = vld [vmem:[#allocation7 + $0x1e0] ss:$8 sps:$4 sm:$0xff]  }
 0x3d4   :  { %2836 = vmatpush1.bf16.msra.mxu1 %v5013_v42  ;;  %v5045_v53 = vld [vmem:[#allocation7 + $0x1f4] ss:$8 sps:$4 sm:$0xff]   ;;  %v5043_v15 = vld [vmem:[#allocation7 + $0x1f0] ss:$8 sps:$4 sm:$0xff]   ;;  %v5048_v42 = vld [vmem:[#allocation7 + $0x204] ss:$8 sps:$4 sm:$0xff]  }
 0x3d5   :  { %v2218_v56 = vmax.f32 %v4457_v30, %v4458_v8  ;;  %2837 = vmatprep.subr.bf16.mxu1 %v5018_v34  ;;  %v6176_v37 = vpack.c.bf16 %v2294_v31, %v2293_v48  ;;  %v5046_v28 = vld [vmem:[#allocation7 + $0x200] ss:$8 sps:$4 sm:$0xff]   ;;  %v5051_v41 = vld [vmem:[#allocation7 + $0x214] ss:$8 sps:$4 sm:$0xff]   ;;  %v5049_v6 = vld [vmem:[#allocation7 + $0x210] ss:$8 sps:$4 sm:$0xff]  }
 0x3d6   :  { %v5054_v34 = vld [vmem:[#allocation7 + $0x224] ss:$8 sps:$4 sm:$0xff]   ;;  %v5052_v29 = vld [vmem:[#allocation7 + $0x220] ss:$8 sps:$4 sm:$0xff]   ;;  %v5057_v16 = vld [vmem:[#allocation7 + $0x234] ss:$8 sps:$4 sm:$0xff]  }
 0x3d7   :  { %v2068_v62 = vpop.f32.mrb[92].mxu0  ;;  %2678 = vmatmul.mubr.bf16.gmra.mrb[108].mxu1 %v6074_v13  ;;  %v5055_v30 = vld [vmem:[#allocation7 + $0x230] ss:$8 sps:$4 sm:$0xff]   ;;  %v5060_v49 = vld [vmem:[#allocation7 + $0x244] ss:$8 sps:$4 sm:$0xff]  }
 0x3d8   :  { %v4459_v18 = vadd.f32 %v2068_v62, %v6382_v23  ;;  %v2070_v55 = vpop.f32.mrb[93].mxu0  ;;  %2687 = vmatprep.mubr.bf16.mxu1 %v6338_v61  ;;  %2838 = vmatpush1.bf16.msra.mxu1 %v5016_v43  ;;  %v5061_v7 = vld [vmem:[#allocation7 + $0x250] ss:$8 sps:$4 sm:$0xff]   ;;  %v5066_v8 = vld [vmem:[#allocation7 + $0x264] ss:$8 sps:$4 sm:$0xff]  }
 0x3d9   :  { %v4460_v63 = vadd.f32 %v2070_v55, %v6383_v32  ;;  %v2072_v51 = vpop.f32.mrb[94].mxu0  ;;  %2839 = vmatprep.subr.bf16.mxu1 %v5021_v0  ;;  %v5064_v48 = vld [vmem:[#allocation7 + $0x260] ss:$8 sps:$4 sm:$0xff]   ;;  %v5069_v31 = vld [vmem:[#allocation7 + $0x274] ss:$8 sps:$4 sm:$0xff]  }
 0x3da   :  { %v4461_v10 = vadd.f32 %v2072_v51, %v6384_v19  ;;  %v2074_v20 = vpop.f32.mrb[95].mxu0  ;;  %v5067_v43 = vld [vmem:[#allocation7 + $0x270] ss:$8 sps:$4 sm:$0xff]   ;;  %v5071_v0 = vld [vmem:[#allocation8] sm:$0xff]   ;;  %v5072_v62 = vld [vmem:[#allocation8 + $0x48] sm:$0xff]  }
 0x3db   :  { %v2219_v1 = vmax.f32 %v4459_v18, %v4460_v63  ;;  %v4462_v52 = vadd.f32 %v2074_v20, %v6385_v47  ;;  %v5073_v23 = vld [vmem:[#allocation8 + $0x8] sm:$0xff]   ;;  %v5074_v18 = vld [vmem:[#allocation8 + $0x50] sm:$0xff]   ;;  %v5086_v63 = vld [vmem:[#allocation8 + $0xc0] sm:$0xff]  }
 0x3dc   :  { %2840 = vmatpush1.bf16.msra.mxu1 %v5019_v33  ;;  %v5075_v55 = vld [vmem:[#allocation8 + $0x10] sm:$0xff]   ;;  %v5081_v33 = vld [vmem:[#allocation8 + $0x28] sm:$0xff]  }
 0x3dd   :  { %v2243_v38 = vmax.f32 %v2217_v40, %v2219_v1  ;;  %v2220_v11 = vmax.f32 %v4461_v10, %v4462_v52  ;;  %3067 = vmatprep.subr.bf16.mxu1 %v5024_v44  ;;  %v5063_v40 = vld [vmem:[#allocation7 + $0x254] ss:$8 sps:$4 sm:$0xff]   ;;  %v6386_v47 = vld [vmem:[#allocation63_spill] sm:$0xff] }
 0x3de   :  { %v5083_v32 = vld [vmem:[#allocation8 + $0x30] sm:$0xff]   ;;  %v3480_v52 = vsub.s32 1, %v6386_v47 }
 0x3df   :  { %v2244_v45 = vmax.f32 %v2218_v56, %v2220_v11  ;;  %2688 = vmatmul.mubr.bf16.gmra.mrb[112].mxu1 %v6088_v9  ;;  %v2271_v58 = vadd.f32 %v6025_v35, %v2243_v38  ;;  %v5070_v56 = vld [vmem:[#allocation8 + $0x40] sm:$0xff]  }
 0x3e0   :  { %2697 = vmatprep.mubr.bf16.mxu1 %v6338_v61 }
 0x3e1   :  { %v2272_v12 = vadd.f32 %v6025_v35, %v2244_v45  ;;  %v2295_v2 = vmax.f32 %v2271_v58, 0.0  ;;  %v5025_v35 = vld [vmem:[#allocation7 + $0x190] ss:$8 sps:$4 sm:$0xff]   ;;  %v6247_v58 = vld [vmem:[%s6284_s5] sm:$0xff]  ;;  %s5271_s5 = smov [#allocation11]  }
 0x3e2   :  { %s3983_s15 = sshll.u32 %s5271_s5, 4  ;;  %s3984_s15 = int_to_ptr.vmem [resolvable:$true] %s3983_s15 }
 0x3e3   :  { %v2296_v25 = vmax.f32 %v2272_v12, 0.0  ;;  %v6250_v12 = vrot.slane %v6247_v58, %v3480_v52  ;;  %s5229_s16 = scalar_lea.vmem %s3984_s15, 256  ;;  %p5234_p13 = scmp.lt.s32.totalorder %s3984_s15, %s3984_s15 }
 0x3e4   :  { %p5230_p12 = scmp.ne.s32.totalorder %s3984_s15, %s5229_s16  ;;  %p5235_p0 = scmp.lt.s32.totalorder %s5229_s16, %s5229_s16 }
 0x3e5   :  { %v6188_v3 = vpack.c.bf16 %v2296_v25, %v2295_v2 }
 0x3e6   :  { %p5236_p1 = por %p5235_p0, %p5234_p13 }
 0x3e7   :  { %2698 = vmatmul.mubr.bf16.gmra.mrb[116].mxu1 %v6102_v5 }
 0x3e8   :  { %2707 = vmatprep.mubr.bf16.mxu1 %v6338_v61  ;;  %p5237_p2 = pnand %p5236_p1, %p5230_p12 }
 0x3ef   :  { %2708 = vmatmul.mubr.bf16.gmra.mrb[120].mxu1 %v6116_v21 }
 0x3f0   :  { %2717 = vmatprep.mubr.bf16.mxu1 %v6338_v61 }
 0x3f7   :  { %2718 = vmatmul.mubr.bf16.gmra.mrb[124].mxu1 %v6130_v17 }
 0x3f8   :  { %2857 = vmatprep.mubr.bf16.mxu1 %v6338_v61 }
 0x3ff   :  { %2858 = vmatmul.mubr.bf16.vlgmr.msra.gmra.mrb[96].mxu1 %v6060_v46  ;;  %v5034_v46 = vld [vmem:[#allocation7 + $0x1c0] ss:$8 sps:$4 sm:$0xff]  }
 0x400   :  { %3068 = vmatpush1.bf16.msra.mxu1 %v5022_v26  ;;  %2867 = vmatprep.mubr.bf16.mxu1 %v6338_v61 }
 0x401   :  { %3069 = vmatprep.subr.bf16.mxu1 %v5027_v22 }
 0x404   :  { %3070 = vmatpush1.bf16.msra.mxu1 %v5025_v35 }
 0x405   :  { %3071 = vmatprep.subr.bf16.mxu1 %v5030_v4 }
 0x407   :  { %2868 = vmatmul.mubr.bf16.gmra.mrb[100].mxu1 %v6074_v13 }
 0x408   :  { %2877 = vmatprep.mubr.bf16.mxu1 %v6338_v61  ;;  %3072 = vmatpush1.bf16.msra.mxu1 %v5028_v60 }
 0x409   :  { %3073 = vmatprep.subr.bf16.mxu1 %v5033_v59 }
 0x40c   :  { %3074 = vmatpush1.bf16.msra.mxu1 %v5031_v36 }
 0x40d   :  { %3075 = vmatprep.subr.bf16.mxu1 %v5036_v24 }
 0x40f   :  { %2878 = vmatmul.mubr.bf16.gmra.mrb[104].mxu1 %v6088_v9 }
 0x410   :  { %2887 = vmatprep.mubr.bf16.mxu1 %v6338_v61  ;;  %3076 = vmatpush1.bf16.msra.mxu1 %v5034_v46 }
 0x411   :  { %3077 = vmatprep.subr.bf16.mxu1 %v5039_v39 }
 0x414   :  { %3078 = vmatpush1.bf16.msra.mxu1 %v5037_v27 }
 0x415   :  { %3079 = vmatprep.subr.bf16.mxu1 %v5042_v50 }
 0x417   :  { %2888 = vmatmul.mubr.bf16.gmra.mrb[108].mxu1 %v6102_v5 }
 0x418   :  { %2897 = vmatprep.mubr.bf16.mxu1 %v6338_v61  ;;  %3080 = vmatpush1.bf16.msra.mxu1 %v5040_v14 }
 0x419   :  { %3081 = vmatprep.subr.bf16.mxu1 %v5045_v53 }
 0x41c   :  { %3082 = vmatpush1.bf16.msra.mxu1 %v5043_v15 }
 0x41d   :  { %3309 = vmatprep.subr.bf16.mxu1 %v5048_v42 }
 0x41f   :  { %2898 = vmatmul.mubr.bf16.gmra.mrb[112].mxu1 %v6116_v21 }
 0x420   :  { %2907 = vmatprep.mubr.bf16.mxu1 %v6338_v61 }
 0x427   :  { %2908 = vmatmul.mubr.bf16.gmra.mrb[116].mxu1 %v6130_v17 }
 0x428   :  { %2917 = vmatprep.mubr.bf16.mxu1 %v6338_v61 }
 0x42f   :  { %2918 = vmatmul.mubr.bf16.gmra.mrb[120].mxu1 %v6144_v54 }
 0x430   :  { %2927 = vmatprep.mubr.bf16.mxu1 %v6338_v61 }
 0x437   :  { %2928 = vmatmul.mubr.bf16.gmra.mrb[124].mxu1 %v6160_v57 }
 0x438   :  { %3099 = vmatprep.mubr.bf16.mxu1 %v6338_v61 }
 0x43f   :  { %3100 = vmatmul.mubr.bf16.vlgmr.msra.gmra.mrb[96].mxu1 %v6074_v13  ;;  %v5058_v13 = vld [vmem:[#allocation7 + $0x240] ss:$8 sps:$4 sm:$0xff]  }
 0x440   :  { %3310 = vmatpush1.bf16.msra.mxu1 %v5046_v28  ;;  %3109 = vmatprep.mubr.bf16.mxu1 %v6338_v61 }
 0x441   :  { %3311 = vmatprep.subr.bf16.mxu1 %v5051_v41 }
 0x444   :  { %3312 = vmatpush1.bf16.msra.mxu1 %v5049_v6 }
 0x445   :  { %3313 = vmatprep.subr.bf16.mxu1 %v5054_v34 }
 0x447   :  { %3110 = vmatmul.mubr.bf16.gmra.mrb[100].mxu1 %v6088_v9 }
 0x448   :  { %3119 = vmatprep.mubr.bf16.mxu1 %v6338_v61  ;;  %3314 = vmatpush1.bf16.msra.mxu1 %v5052_v29 }
 0x449   :  { %3315 = vmatprep.subr.bf16.mxu1 %v5057_v16 }
 0x44c   :  { %3316 = vmatpush1.bf16.msra.mxu1 %v5055_v30 }
 0x44d   :  { %3317 = vmatprep.subr.bf16.mxu1 %v5060_v49 }
 0x44f   :  { %3120 = vmatmul.mubr.bf16.gmra.mrb[104].mxu1 %v6102_v5 }
 0x450   :  { %3129 = vmatprep.mubr.bf16.mxu1 %v6338_v61  ;;  %3318 = vmatpush1.bf16.msra.mxu1 %v5058_v13 }
 0x451   :  { %3319 = vmatprep.subr.bf16.mxu1 %v5063_v40 }
 0x454   :  { %3320 = vmatpush1.bf16.msra.mxu1 %v5061_v7 }
 0x455   :  { %3321 = vmatprep.subr.bf16.mxu1 %v5066_v8 }
 0x457   :  { %3130 = vmatmul.mubr.bf16.gmra.mrb[108].mxu1 %v6116_v21 }
 0x458   :  { %3139 = vmatprep.mubr.bf16.mxu1 %v6338_v61  ;;  %3322 = vmatpush1.bf16.msra.mxu1 %v5064_v48 }
 0x459   :  { %3323 = vmatprep.subr.bf16.mxu1 %v5069_v31 }
 0x45c   :  { %3324 = vmatpush1.bf16.msra.mxu1 %v5067_v43 }
 0x45d   :  { %4290 = vmatprep.subr.bf16.mxu1 %v5070_v56 }
 0x45f   :  { %3140 = vmatmul.mubr.bf16.gmra.mrb[112].mxu1 %v6130_v17 }
 0x460   :  { %3149 = vmatprep.mubr.bf16.mxu1 %v6338_v61 }
 0x467   :  { %3150 = vmatmul.mubr.bf16.gmra.mrb[116].mxu1 %v6144_v54 }
 0x468   :  { %3159 = vmatprep.mubr.bf16.mxu1 %v6338_v61 }
 0x46f   :  { %3160 = vmatmul.mubr.bf16.gmra.mrb[120].mxu1 %v6160_v57 }
 0x470   :  { %3169 = vmatprep.mubr.bf16.mxu1 %v6338_v61 }
 0x477   :  { %3170 = vmatmul.mubr.bf16.gmra.mrb[124].mxu1 %v6176_v37 }
 0x478   :  { %3341 = vmatprep.mubr.bf16.mxu1 %v6338_v61 }
 0x47f   :  { %3342 = vmatmul.mubr.bf16.vlgmr.msra.gmra.mrb[96].mxu1 %v6088_v9  ;;  %v5076_v9 = vld [vmem:[#allocation8 + $0x58] sm:$0xff]  }
 0x480   :  { %3351 = vmatprep.mubr.bf16.mxu1 %v6338_v61  ;;  %4291 = vmatpush3.bf16.msra.mxu1 %v5071_v0  ;;  %v5087_v0 = vld [vmem:[#allocation8 + $0x80] sm:$0xff]  }
 0x481   :  { %4292 = vmatprep.subr.bf16.mxu1 %v5072_v62  ;;  %v5088_v62 = vld [vmem:[#allocation8 + $0xc8] sm:$0xff]  }
 0x484   :  { %4293 = vmatpush3.bf16.msra.mxu1 %v5073_v23 }
 0x485   :  { %4294 = vmatprep.subr.bf16.mxu1 %v5074_v18  ;;  %v5089_v18 = vld [vmem:[#allocation8 + $0x88] sm:$0xff]  }
 0x487   :  { %3352 = vmatmul.mubr.bf16.gmra.mrb[100].mxu1 %v6102_v5  ;;  %v5077_v5 = vld [vmem:[#allocation8 + $0x18] sm:$0xff]  }
 0x488   :  { %3361 = vmatprep.mubr.bf16.mxu1 %v6338_v61  ;;  %4295 = vmatpush3.bf16.msra.mxu1 %v5075_v55 }
 0x489   :  { %4296 = vmatprep.subr.bf16.mxu1 %v5076_v9  ;;  %v5090_v9 = vld [vmem:[#allocation8 + $0xd0] sm:$0xff]  }
 0x48c   :  { %4297 = vmatpush3.bf16.msra.mxu1 %v5077_v5 }
 0x48f   :  { %3362 = vmatmul.mubr.bf16.gmra.mrb[104].mxu1 %v6116_v21  ;;  %v5078_v21 = vld [vmem:[#allocation8 + $0x60] sm:$0xff]  }
 0x490   :  { %3371 = vmatprep.mubr.bf16.mxu1 %v6338_v61  ;;  %4298 = vmatprep.subr.bf16.mxu1 %v5078_v21 }
 0x497   :  { %3372 = vmatmul.mubr.bf16.gmra.mrb[108].mxu1 %v6130_v17  ;;  %v5079_v17 = vld [vmem:[#allocation8 + $0x20] sm:$0xff]  }
 0x498   :  { %3381 = vmatprep.mubr.bf16.mxu1 %v6338_v61  ;;  %4299 = vmatpush3.bf16.msra.mxu1 %v5079_v17 }
 0x49f   :  { %3382 = vmatmul.mubr.bf16.gmra.mrb[112].mxu1 %v6144_v54  ;;  %v5080_v54 = vld [vmem:[#allocation8 + $0x68] sm:$0xff]  }
 0x4a0   :  { %3391 = vmatprep.mubr.bf16.mxu1 %v6338_v61  ;;  %4300 = vmatprep.subr.bf16.mxu1 %v5080_v54 }
 0x4a1   :  { %4301 = vmatpush3.bf16.msra.mxu1 %v5081_v33 }
 0x4a7   :  { %3392 = vmatmul.mubr.bf16.gmra.mrb[116].mxu1 %v6160_v57  ;;  %v5082_v57 = vld [vmem:[#allocation8 + $0x70] sm:$0xff]  }
 0x4a8   :  { %3401 = vmatprep.mubr.bf16.mxu1 %v6338_v61  ;;  %4302 = vmatprep.subr.bf16.mxu1 %v5082_v57  ;;  %v5091_v57 = vld [vmem:[#allocation8 + $0x90] sm:$0xff]  }
 0x4a9   :  { %4303 = vmatpush3.bf16.msra.mxu1 %v5083_v32  ;;  %v5092_v32 = vld [vmem:[#allocation8 + $0xd8] sm:$0xff]  }
 0x4af   :  { %3402 = vmatmul.mubr.bf16.gmra.mrb[120].mxu1 %v6176_v37  ;;  %v5084_v37 = vld [vmem:[#allocation8 + $0x78] sm:$0xff]  }
 0x4b0   :  { %3411 = vmatprep.mubr.bf16.mxu1 %v6338_v61  ;;  %v5085_v61 = vld [vmem:[#allocation8 + $0x38] sm:$0xff]   ;;  %4304 = vmatprep.subr.bf16.mxu1 %v5084_v37 }
 0x4b1   :  { %4305 = vmatpush3.bf16.msra.mxu1 %v5085_v61 }
 0x4b2   :  { %4312 = vmatprep.subr.bf16.mxu1 %v5086_v63 }
 0x4b7   :  { %3412 = vmatmul.mubr.bf16.gmra.mrb[124].mxu1 %v6188_v3 }
 0x552   :  { %v3343_v51 = vpop.f32.mrb[96].mxu1 }
 0x553   :  { %v3345_v44 = vpop.f32.mrb[97].mxu1 }
 0x554   :  { %v3454_v19 = vmax.f32 %v3343_v51, %v3345_v44  ;;  %v3347_v10 = vpop.f32.mrb[98].mxu1  ;;  %v5093_v44 = vld [vmem:[#allocation8 + $0x98] sm:$0xff]  }
 0x555   :  { %v3349_v20 = vpop.f32.mrb[99].mxu1 }
 0x556   :  { %v3455_v1 = vmax.f32 %v3347_v10, %v3349_v20  ;;  %v5094_v10 = vld [vmem:[#allocation8 + $0xe0] sm:$0xff]  }
 0x55a   :  { %v3353_v38 = vpop.f32.mrb[100].mxu1 }
 0x55b   :  { %v3355_v11 = vpop.f32.mrb[101].mxu1 }
 0x55c   :  { %v3456_v45 = vmax.f32 %v3353_v38, %v3355_v11  ;;  %v3357_v2 = vpop.f32.mrb[102].mxu1 }
 0x55d   :  { %v3359_v25 = vpop.f32.mrb[103].mxu1 }
 0x55e   :  { %v3470_v3 = vmax.f32 %v3454_v19, %v3456_v45  ;;  %v3457_v26 = vmax.f32 %v3357_v2, %v3359_v25  ;;  %v5095_v25 = vld [vmem:[#allocation8 + $0xa0] sm:$0xff]  }
 0x560   :  { %v3482_v22 = vadd.f32 %v6250_v12, %v3470_v3  ;;  %v3471_v35 = vmax.f32 %v3455_v1, %v3457_v26  ;;  %v5096_v3 = vld [vmem:[#allocation8 + $0xe8] sm:$0xff]  }
 0x562   :  { %v3483_v4 = vadd.f32 %v6250_v12, %v3471_v35  ;;  %v3363_v60 = vpop.f32.mrb[104].mxu1  ;;  %v3490_v36 = vmax.f32 %v3482_v22, 0.0  ;;  %v5097_v22 = vld [vmem:[#allocation8 + $0xa8] sm:$0xff]  }
 0x563   :  { %v3365_v59 = vpop.f32.mrb[105].mxu1 }
 0x564   :  { %v3491_v24 = vmax.f32 %v3483_v4, 0.0  ;;  %v3458_v46 = vmax.f32 %v3363_v60, %v3365_v59  ;;  %v3367_v39 = vpop.f32.mrb[106].mxu1  ;;  %v5098_v4 = vld [vmem:[#allocation8 + $0xf0] sm:$0xff]  }
 0x565   :  { %v3369_v27 = vpop.f32.mrb[107].mxu1 }
 0x566   :  { %v3498_v50 = vpack.c.bf16 %v3491_v24, %v3490_v36  ;;  %v3459_v14 = vmax.f32 %v3367_v39, %v3369_v27  ;;  %v5099_v39 = vld [vmem:[#allocation8 + $0xb0] sm:$0xff]   ;;  %v5100_v27 = vld [vmem:[#allocation8 + $0xf8] sm:$0xff]  }
 0x56a   :  { %v3373_v53 = vpop.f32.mrb[108].mxu1 }
 0x56b   :  { %v3375_v15 = vpop.f32.mrb[109].mxu1 }
 0x56c   :  { %v3460_v42 = vmax.f32 %v3373_v53, %v3375_v15  ;;  %v3377_v28 = vpop.f32.mrb[110].mxu1  ;;  %v5101_v15 = vld [vmem:[#allocation8 + $0xb8] sm:$0xff]  }
 0x56d   :  { %v3379_v41 = vpop.f32.mrb[111].mxu1 }
 0x56e   :  { %v3472_v6 = vmax.f32 %v3458_v46, %v3460_v42  ;;  %v3461_v34 = vmax.f32 %v3377_v28, %v3379_v41 }
 0x570   :  { %v3484_v29 = vadd.f32 %v6250_v12, %v3472_v6  ;;  %v3473_v16 = vmax.f32 %v3459_v14, %v3461_v34  ;;  %v5102_v6 = vld [vmem:[#allocation10] sm:$0xff]   ;;  %v5269_v34 = vmov 0.0  }
 0x572   :  { %v3485_v30 = vadd.f32 %v6250_v12, %v3473_v16  ;;  %v3383_v49 = vpop.f32.mrb[112].mxu1  ;;  %v3492_v40 = vmax.f32 %v3484_v29, 0.0  ;;  %v5103_v29 = vld [vmem:[#allocation10 + $0x8] sm:$0xff]   ;;  %v5104_v16 = vld [vmem:[#allocation10 + $0x10] sm:$0xff]  }
 0x573   :  { %v3385_v13 = vpop.f32.mrb[113].mxu1 }
 0x574   :  { %v3493_v7 = vmax.f32 %v3485_v30, 0.0  ;;  %v3462_v8 = vmax.f32 %v3383_v49, %v3385_v13  ;;  %v3387_v48 = vpop.f32.mrb[114].mxu1  ;;  %v5106_v30 = vld [vmem:[#allocation10 + $0x20] sm:$0xff]   ;;  %v5107_v49 = vld [vmem:[#allocation10 + $0x28] sm:$0xff]   ;;  %v5108_v13 = vld [vmem:[#allocation10 + $0x30] sm:$0xff]  }
 0x575   :  { %v3389_v31 = vpop.f32.mrb[115].mxu1 }
 0x576   :  { %v3463_v43 = vmax.f32 %v3387_v48, %v3389_v31  ;;  %v3499_v56 = vpack.c.bf16 %v3493_v7, %v3492_v40  ;;  %v5109_v40 = vld [vmem:[#allocation10 + $0x38] sm:$0xff]  }
 0x578   :  { %3794 = vmatprep.mubr.bf16.mxu1 %v3499_v56 }
 0x579   :  { %3795 = vmatmul.mubr.bf16.vlgmr.msra.gmra.mrb[128].mxu1 %v3498_v50 }
 0x57a   :  { %v3393_v23 = vpop.f32.mrb[116].mxu1  ;;  %4313 = vmatpush3.bf16.msra.mxu1 %v5087_v0  ;;  %v3568_v0 = vsub.s32 2, %v6386_v47 }
 0x57b   :  { %v3395_v55 = vpop.f32.mrb[117].mxu1  ;;  %4314 = vmatprep.subr.bf16.mxu1 %v5088_v62 }
 0x57c   :  { %v3464_v5 = vmax.f32 %v3393_v23, %v3395_v55  ;;  %v3397_v21 = vpop.f32.mrb[118].mxu1  ;;  %v3569_v62 = vrot.slane %v6247_v58, %v3568_v0 }
 0x57d   :  { %v3399_v17 = vpop.f32.mrb[119].mxu1 }
 0x57e   :  { %v3474_v54 = vmax.f32 %v3462_v8, %v3464_v5  ;;  %v3465_v33 = vmax.f32 %v3397_v21, %v3399_v17  ;;  %4315 = vmatpush3.bf16.msra.mxu1 %v5089_v18 }
 0x57f   :  { %4316 = vmatprep.subr.bf16.mxu1 %v5090_v9 }
 0x580   :  { %v3486_v37 = vadd.f32 %v6250_v12, %v3474_v54  ;;  %v3475_v61 = vmax.f32 %v3463_v43, %v3465_v33 }
 0x582   :  { %v3487_v63 = vadd.f32 %v6250_v12, %v3475_v61  ;;  %v3403_v51 = vpop.f32.mrb[120].mxu1  ;;  %4317 = vmatpush3.bf16.msra.mxu1 %v5091_v57  ;;  %v3494_v20 = vmax.f32 %v3486_v37, 0.0 }
 0x583   :  { %v3405_v19 = vpop.f32.mrb[121].mxu1  ;;  %4318 = vmatprep.subr.bf16.mxu1 %v5092_v32 }
 0x584   :  { %v3495_v1 = vmax.f32 %v3487_v63, 0.0  ;;  %v3466_v52 = vmax.f32 %v3403_v51, %v3405_v19  ;;  %v3407_v38 = vpop.f32.mrb[122].mxu1  ;;  %v3865_v63 = vsub.s32 3, %v6386_v47 }
 0x585   :  { %v3409_v11 = vpop.f32.mrb[123].mxu1 }
 0x586   :  { %v3500_v45 = vpack.c.bf16 %v3495_v1, %v3494_v20  ;;  %v3467_v2 = vmax.f32 %v3407_v38, %v3409_v11  ;;  %4319 = vmatpush3.bf16.msra.mxu1 %v5093_v44  ;;  %v3866_v51 = vrot.slane %v6247_v58, %v3865_v63 }
 0x587   :  { %4320 = vmatprep.subr.bf16.mxu1 %v5094_v10 }
 0x58a   :  { %v3413_v26 = vpop.f32.mrb[124].mxu1  ;;  %4321 = vmatpush3.bf16.msra.mxu1 %v5095_v25 }
 0x58b   :  { %v3415_v35 = vpop.f32.mrb[125].mxu1  ;;  %4322 = vmatprep.subr.bf16.mxu1 %v5096_v3 }
 0x58c   :  { %v3468_v60 = vmax.f32 %v3413_v26, %v3415_v35  ;;  %v3417_v59 = vpop.f32.mrb[126].mxu1 }
 0x58d   :  { %v3419_v36 = vpop.f32.mrb[127].mxu1 }
 0x58e   :  { %v3476_v24 = vmax.f32 %v3466_v52, %v3468_v60  ;;  %v3469_v46 = vmax.f32 %v3417_v59, %v3419_v36  ;;  %4323 = vmatpush3.bf16.msra.mxu1 %v5097_v22 }
 0x58f   :  { %4324 = vmatprep.subr.bf16.mxu1 %v5098_v4 }
 0x590   :  { %v3488_v50 = vadd.f32 %v6250_v12, %v3476_v24  ;;  %v3477_v14 = vmax.f32 %v3467_v2, %v3469_v46 }
 0x592   :  { %v3489_v53 = vadd.f32 %v6250_v12, %v3477_v14  ;;  %4325 = vmatpush3.bf16.msra.mxu1 %v5099_v39  ;;  %v3496_v42 = vmax.f32 %v3488_v50, 0.0  ;;  %v5105_v12 = vld [vmem:[#allocation10 + $0x18] sm:$0xff]  }
 0x593   :  { %4326 = vmatprep.subr.bf16.mxu1 %v5100_v27 }
 0x594   :  { %v3497_v28 = vmax.f32 %v3489_v53, 0.0 }
 0x596   :  { %4327 = vmatpush3.bf16.msra.mxu1 %v5101_v15  ;;  %v3501_v41 = vpack.c.bf16 %v3497_v28, %v3496_v42 }
 0x597   :  { %4343 = vmatprep.subr.bf16.mxu1 %v5269_v34 }
 0x598   :  { %3835 = vmatprep.mubr.bf16.mxu1 %v3501_v41 }
 0x599   :  { %3836 = vmatmul.mubr.bf16.vlgmr.msra.gmra.mrb[132].mxu1 %v3500_v45 }
 0x59a   :  { %4344 = vmatpush3.bf16.msra.mxu1 %v5102_v6  ;;  %4359 = vmatprep.mubr.msk.bf16.mxu1 %vm5270_vm2, %v5269_v34 }
 0x59b   :  { %4345 = vmatprep.subr.bf16.mxu1 %v5269_v34 }
 0x59e   :  { %4346 = vmatpush3.bf16.msra.mxu1 %v5103_v29 }
 0x59f   :  { %4347 = vmatprep.subr.bf16.mxu1 %v5269_v34 }
 0x5a2   :  { %4348 = vmatpush3.bf16.msra.mxu1 %v5104_v16 }
 0x5a3   :  { %4349 = vmatprep.subr.bf16.mxu1 %v5269_v34 }
 0x5a6   :  { %4350 = vmatpush3.bf16.msra.mxu1 %v5105_v12 }
 0x5a7   :  { %4351 = vmatprep.subr.bf16.mxu1 %v5269_v34 }
 0x5aa   :  { %4352 = vmatpush3.bf16.msra.mxu1 %v5106_v30 }
 0x5ab   :  { %4353 = vmatprep.subr.bf16.mxu1 %v5269_v34 }
 0x5ae   :  { %4354 = vmatpush3.bf16.msra.mxu1 %v5107_v49 }
 0x5af   :  { %4355 = vmatprep.subr.bf16.mxu1 %v5269_v34 }
 0x5b2   :  { %4356 = vmatpush3.bf16.msra.mxu1 %v5108_v13 }
 0x5b3   :  { %4357 = vmatprep.subr.bf16.mxu1 %v5269_v34 }
 0x5b6   :  { %4358 = vmatpush3.bf16.msra.mxu1 %v5109_v40 }
 0x64c   :  { %v4306_v7 = vpop.f32.mrb[128].mxu1 }
 0x64d   :  { %v4307_v8 = vpop.f32.mrb[129].mxu1 }
 0x64e   :  { %v4308_v48 = vadd.f32 %v4307_v8, %v4306_v7  ;;  %v4309_v31 = vpop.f32.mrb[130].mxu1 }
 0x64f   :  { %v4310_v43 = vpop.f32.mrb[131].mxu1 }
 0x650   :  { %v4311_v56 = vadd.f32 %v4310_v43, %v4309_v31  ;;  %v3797_v55 = vadd.f32 %v4308_v48, %v3569_v62 }
 0x652   :  { %v3800_v17 = vadd.f32 %v4311_v56, %v3569_v62 }
 0x66c   :  { %v4328_v23 = vpop.f32.mrb[132].mxu1 }
 0x66d   :  { %v4329_v18 = vpop.f32.mrb[133].mxu1 }
 0x66e   :  { %v4330_v9 = vadd.f32 %v4329_v18, %v4328_v23  ;;  %v4331_v5 = vpop.f32.mrb[134].mxu1 }
 0x66f   :  { %v4332_v21 = vpop.f32.mrb[135].mxu1 }
 0x670   :  { %v3838_v54 = vadd.f32 %v4330_v9, %v3797_v55  ;;  %v4333_v33 = vadd.f32 %v4332_v21, %v4331_v5 }
 0x672   :  { %v3841_v57 = vadd.f32 %v4333_v33, %v3800_v17  ;;  %v3844_v32 = vmax.f32 %v3838_v54, 0.0 }
 0x674   :  { %v3845_v37 = vmax.f32 %v3841_v57, 0.0 }
 0x676   :  { %v3846_v61 = vpack.c.bf16 %v3845_v37, %v3844_v32 }
 0x678   :  { %4360 = vmatmul.mubr.bf16.vlgmr.msra.gmra.mrb[136].mxu1 %v3846_v61 }
 0x74b   :  { %v3949_v44 = vpop.f32.mrb[136].mxu1 }
 0x74c   :  { %v3950_v19 = vadd.f32 %v3949_v44, %v3866_v51  ;;  %v4361_v10 = vpop.f32.mrb[137].mxu1 }
 0x74d   :  { %v3952_v20 = vpop.f32.mrb[138].mxu1 }
 0x74e   :  { %3956 = vmax.xlane.f32.xlu0 %v3950_v19  ;;  %v4362_v1 = vpop.f32.mrb[139].mxu1  ;;  %v3953_v52 = vadd.f32 %v3952_v20, %v3866_v51 }
 0x752   :  { %3958 = vmax.xlane.f32.xlu0 %v3953_v52 }
 0x7db   :  { %v3957_v38 = vpop.xlane.xlu0 %3956 }
 0x7dc   :  { %v3960_v11 = vsub.f32 %v3950_v19, %v3957_v38 }
 0x7de   :  { %v3962_v45 = vmul.f32 1.442695, %v3960_v11 }
 0x7df   :  { %v3959_v2 = vpop.xlane.xlu0 %3958 }
 0x7e0   :  { %v3961_v25 = vsub.f32 %v3953_v52, %v3959_v2  ;;  %5110 = vpow2.f32 %v3962_v45 }
 0x7e2   :  { %v3964_v3 = vmul.f32 1.442695, %v3961_v25 }
 0x7e4   :  { %5112 = vpow2.f32 %v3964_v3 }
 0x7ea   :  { %v5111_v26 = vpop.eup %5110 }
 0x7eb   :  { %3966 = vadd.xlane.f32.xlu1 %v5111_v26 }
 0x7ee   :  { %v5113_v47 = vpop.eup %5112 }
 0x7ef   :  { %3968 = vadd.xlane.f32.xlu1 %v5113_v47 }
 0x878   :  { %v3967_v58 = vpop.xlane.xlu1 %3966 }
 0x879   :  { %5114 = vlog2.f32 %v3967_v58 }
 0x87c   :  { %v3969_v22 = vpop.xlane.xlu1 %3968 }
 0x87d   :  { %5116 = vlog2.f32 %v3969_v22 }
 0x883   :  { %v5115_v35 = vpop.eup %5114 }
 0x884   :  { %v3971_v4 = vmul.f32 0.6931472, %v5115_v35 }
 0x886   :  { %v3974_v60 = vsub.f32 %v3960_v11, %v3971_v4 }
 0x887   :  { %v5117_v59 = vpop.eup %5116 }
 0x888   :  { %3976 = vst [vmem:[#allocation11] sm:$0xff] %v3974_v60  ;;  %v3973_v36 = vmul.f32 0.6931472, %v5117_v59 }
 0x88a   :  { %v3975_v24 = vsub.f32 %v3961_v25, %v3973_v36 }
 0x88c   :  { %3977 = vst [vmem:[#allocation11 + $0x8] sm:$0xff] %v3975_v24 }
 0x88d   :  { %5240 = shalt.err (!%p5237_p2)
}
 0x88e   :  { %s5241_s19 = scalar_lea.hbm %s6285_s6, 256 }
 0x88f   :  { %p5242_p3 = scmp.ne.s32.totalorder %s6285_s6, %s5241_s19  ;;  %p5245_p4 = scmp.lt.u32.totalorder %s5241_s19, %s6285_s6 }
 0x891   :  { %p5247_p5 = pnand %p5245_p4, %p5242_p3 }
 0x893   :  { %5250 = shalt.err (!%p5247_p5)
}
 0x894   :  { %3989 = dma.vmem_to_hbm [thread:$0]  %s3984_s15, 256, %s6285_s6, [#allocation4], %s5260_s7, %s5260_s7, %s5261_s8  }
 0x895   :  { %5257 = dma.done.wait [#allocation4], 256  }
 0x896   :  { %5258 = vsyncadd [#allocation4], 4294967040 }
 0x897   :  { %3993 = vsyncpa [#allocation3], 1 }
 0x898   :  { %3994 = vsyncpa [#allocation6], 1 }
 0x899   :  { %3995 = vsyncpa [#allocation9], 1 }
 0x89a   :  { %3996 = vsyncpa [#allocation4], 1 }

</bundles_post_ra>
